<compile_context>
chip_gen: v7x
topology: tpu7x:2x2x1
jax: 0.10.0
libtpu: 0.0.40
codegen_flags: <defaults>
</compile_context>

<pallas_src>
import jax
import jax.numpy as jnp
from jax import lax
from jax.experimental import pallas as pl
from jax.experimental.pallas import tpu as pltpu


def _round_up(n, m):
    return ((n + m - 1) // m) * m


def _num_tensorcores():
    """Best-effort TensorCore count for the local chip (1 on v5e/v6e, 2 on v7x)."""
    try:
        info = pltpu.get_tpu_info()
        for name in ("num_cores", "core_count", "num_tensorcores",
                     "tensor_core_count", "num_cores_per_chip"):
            n = getattr(info, name, None)
            if isinstance(n, int) and n > 0:
                return n
    except Exception:
        pass
    try:
        kind = jax.devices()[0].device_kind.lower()
    except Exception:
        return 1
    if any(tag in kind for tag in ("v7", "v5p", "v4")):
        return 2
    return 1


def _make_kernel(*, Ch, K, W, Xr, TC):
    """Returns the fused ConvLSTM cell kernel, specialized on static config."""
    p = (K - 1) // 2
    taps = [(ky - p, kx - p) for ky in range(K) for kx in range(K)]

    def kernel(xpatch_ref, hT_ref, wT_ref, c_ref, mask_ref,
               wci_ref, wcf_ref, wco_ref,
               ch_ref, cc_ref,
               patch_sc, gates_sc):
        TM = c_ref.shape[1]        # pixel columns owned by this grid step
        P = wci_ref.shape[1]       # peephole column period (H*W or TM)

        # ---- build im2col patch in VMEM ------------------------------------
        # rows [0, Xr): x taps + bias ones-row + zero pad (tiny, from wrapper)
        patch_sc[0:Xr, :] = xpatch_ref[...]

        # rows [Xr, Xr + K*K*Ch): h taps, built in-kernel.  Blocks are
        # batch-aligned, so a circular lane roll + border mask reproduces the
        # SAME-padded conv taps exactly (wrapped columns are masked to 0).
        hT = hT_ref[...]
        for t, (dy, dx) in enumerate(taps):
            d = dy * W + dx
            shifted = hT if d == 0 else pltpu.roll(hT, (-d) % TM, axis=1)
            patch_sc[Xr + t * Ch:Xr + (t + 1) * Ch, :] = (
                shifted * mask_ref[t:t + 1, :])

        # ---- one deep fused conv-as-matmul: all 4 gates, all batches, bias --
        gates_sc[...] = jnp.dot(wT_ref[...], patch_sc[...],
                                preferred_element_type=jnp.float32)

        # ---- gate epilogue over <=TC-lane chunks (bounds vreg pressure) -----
        n_chunks = TM // TC
        reps_p = P // TC           # epilogue chunks per peephole period

        def body(j, carry):
            col = pl.multiple_of(j * TC, TC)
            sl = pl.ds(col, TC)
            if reps_p > 1:
                pcol = pl.multiple_of((j % reps_p) * TC, TC)
            else:
                pcol = 0
            psl = pl.ds(pcol, TC)

            xi = gates_sc[0 * Ch:1 * Ch, sl]
            xf = gates_sc[1 * Ch:2 * Ch, sl]
            xc = gates_sc[2 * Ch:3 * Ch, sl]
            xo = gates_sc[3 * Ch:4 * Ch, sl]
            c = c_ref[:, sl]

            ci = jax.nn.sigmoid(xi + c * wci_ref[:, psl])
            cf = jax.nn.sigmoid(xf + c * wcf_ref[:, psl])
            cc = cf * c + ci * jnp.tanh(xc)
            co = jax.nn.sigmoid(xo + cc * wco_ref[:, psl])
            ch_ref[:, sl] = (co * jnp.tanh(cc)).astype(ch_ref.dtype)
            cc_ref[:, sl] = cc.astype(cc_ref.dtype)
            return carry

        lax.fori_loop(0, n_chunks, body, 0, unroll=True)

    return kernel


def conv_lstm_cell_pallas(x, h, c, params):
    """ConvLSTMCell forward. x:(B,Cin,H,W), h/c:(B,Ch,H,W). Returns (ch, cc) NCHW."""
    B, Cin, H, W = x.shape
    Ch = h.shape[1]
    K = params["wxi"].shape[0]
    p = (K - 1) // 2
    HW = H * W
    M = B * HW

    # ---- grid: one block per TensorCore; blocks must stay batch-aligned -----
    G = _num_tensorcores()
    if G > 1 and not (B % G == 0 and (M // G) % 128 == 0):
        G = 1
    TM = M // G                       # multiple of H*W by construction

    # ---- contraction-row layout ----------------------------------------------
    # [ x taps (K*K*Cin) | bias ones-row | zero pad to %8 | h taps (K*K*Ch) ]
    Xrows = K * K * Cin
    Xr = _round_up(Xrows + 1, 8)
    Kd_pad = Xr + K * K * Ch          # 8-multiple; no 128-padding (review #1)

    # ---- pack weights once: rows follow contraction layout, cols = 4*Ch gates
    wx = jnp.concatenate([params["wxi"], params["wxf"],
                          params["wxc"], params["wxo"]], axis=-1)   # (K,K,Cin,4Ch)
    wh = jnp.concatenate([params["whi"], params["whf"],
                          params["whc"], params["who"]], axis=-1)   # (K,K,Ch,4Ch)
    b = jnp.concatenate([params["bxi"], params["bxf"],
                         params["bxc"], params["bxo"]], axis=0)     # (4Ch,)
    w_rows = jnp.concatenate([
        wx.reshape(Xrows, 4 * Ch),
        b.reshape(1, 4 * Ch),
        jnp.zeros((Xr - Xrows - 1, 4 * Ch), x.dtype),
        wh.reshape(K * K * Ch, 4 * Ch)], axis=0)                    # (Kd_pad, 4Ch)
    wT = w_rows.T                                                   # (4Ch, Kd_pad)

    # ---- tiny wrapper-side im2col for x only (Cin small) + bias ones row ----
    xp = jnp.pad(x, ((0, 0), (0, 0), (p, p), (p, p)))
    xtaps = jnp.stack([xp[:, :, ky:ky + H, kx:kx + W]
                       for ky in range(K) for kx in range(K)], axis=0)
    xtaps = jnp.transpose(xtaps, (0, 2, 1, 3, 4)).reshape(Xrows, M)
    xpatch = jnp.concatenate([xtaps,
                              jnp.ones((1, M), x.dtype),
                              jnp.zeros((Xr - Xrows - 1, M), x.dtype)], axis=0)

    # ---- raw channel-major h / c (h im2col now happens inside the kernel) ---
    hT = jnp.transpose(h, (1, 0, 2, 3)).reshape(Ch, M)
    cT = jnp.transpose(c, (1, 0, 2, 3)).reshape(Ch, M)

    # ---- per-tap SAME-padding border masks, repeated per batch-in-block -----
    pos = jnp.arange(HW, dtype=jnp.int32)
    hh, ww = pos // W, pos % W
    mrows = []
    for ky in range(K):
        for kx in range(K):
            dy, dx = ky - p, kx - p
            mrows.append((hh + dy >= 0) & (hh + dy < H)
                         & (ww + dx >= 0) & (ww + dx < W))
    mask = jnp.stack(mrows, axis=0).astype(x.dtype)                 # (K*K, HW)
    mask = jnp.tile(mask, (1, TM // HW))                            # (K*K, TM)

    # ---- peepholes: single (Ch, H*W) copy, no batch broadcast (review #2) ---
    compact_peep = (HW % 128 == 0) or (TM == HW)
    P = HW if compact_peep else TM

    def prep_peep(wp):
        wp = wp.reshape(Ch, HW)
        return wp if compact_peep else jnp.tile(wp, (1, TM // HW))

    wciP = prep_peep(params["wci"])
    wcfP = prep_peep(params["wcf"])
    wcoP = prep_peep(params["wco"])

    # ---- epilogue chunk width: cap lane width at <=256 (review: vreg bound) -
    TC = TM
    for cand in (256, 128):
        if TM % cand == 0 and P % cand == 0:
            TC = cand
            break

    kernel = _make_kernel(Ch=Ch, K=K, W=W, Xr=Xr, TC=TC)

    chT, ccT = pl.pallas_call(
        kernel,
        out_shape=(jax.ShapeDtypeStruct((Ch, M), x.dtype),
                   jax.ShapeDtypeStruct((Ch, M), x.dtype)),
        grid_spec=pltpu.PrefetchScalarGridSpec(
            num_scalar_prefetch=0,
            grid=(G,),
            in_specs=[
                pl.BlockSpec((Xr, TM), lambda g: (0, g)),          # x patch + bias
                pl.BlockSpec((Ch, TM), lambda g: (0, g)),          # h channel-major
                pl.BlockSpec((4 * Ch, Kd_pad), lambda g: (0, 0)),  # packed weights
                pl.BlockSpec((Ch, TM), lambda g: (0, g)),          # c channel-major
                pl.BlockSpec((K * K, TM), lambda g: (0, 0)),       # tap border masks
                pl.BlockSpec((Ch, P), lambda g: (0, 0)),           # Wci
                pl.BlockSpec((Ch, P), lambda g: (0, 0)),           # Wcf
                pl.BlockSpec((Ch, P), lambda g: (0, 0)),           # Wco
            ],
            out_specs=[
                pl.BlockSpec((Ch, TM), lambda g: (0, g)),
                pl.BlockSpec((Ch, TM), lambda g: (0, g)),
            ],
            scratch_shapes=[
                pltpu.VMEM((Kd_pad, TM), jnp.float32),             # im2col patch
                pltpu.VMEM((4 * Ch, TM), jnp.float32),             # gate pre-acts
            ],
        ),
        compiler_params=pltpu.CompilerParams(
            dimension_semantics=("parallel",),
            vmem_limit_bytes=32 * 1024 * 1024),
    )(xpatch, hT, wT, cT, mask, wciP, wcfP, wcoP)

    # channel-major -> NCHW at the module boundary
    ch = jnp.transpose(chT.reshape(Ch, B, H, W), (1, 0, 2, 3))
    cc = jnp.transpose(ccT.reshape(Ch, B, H, W), (1, 0, 2, 3))
    return ch, cc


def conv_lstm_cell_reference(x, h, c, params):
    """Pure-JAX NCHW reference, numerically equal to the PyTorch module."""
    dn = ("NCHW", "HWIO", "NCHW")

    def conv(inp, w, bias=None):
        out = jax.lax.conv_general_dilated(inp, w, (1, 1), "SAME",
                                           dimension_numbers=dn)
        if bias is not None:
            out = out + bias[None, :, None, None]
        return out

    wci = params["wci"][None]
    wcf = params["wcf"][None]
    wco = params["wco"][None]
    ci = jax.nn.sigmoid(conv(x, params["wxi"], params["bxi"])
                        + conv(h, params["whi"]) + c * wci)
    cf = jax.nn.sigmoid(conv(x, params["wxf"], params["bxf"])
                        + conv(h, params["whf"]) + c * wcf)
    cc = cf * c + ci * jnp.tanh(conv(x, params["wxc"], params["bxc"])
                                + conv(h, params["whc"]))
    co = jax.nn.sigmoid(conv(x, params["wxo"], params["bxo"])
                        + conv(h, params["who"]) + cc * wco)
    ch = co * jnp.tanh(cc)
    return ch, cc


def init_params(key, input_channels, hidden_channels, kernel_size, H, W):
    """Synthetic parameters matching the module layout (conv weights in HWIO)."""
    K = kernel_size
    keys = jax.random.split(key, 15)
    s = 0.1

    def w_x(k):
        return s * jax.random.normal(k, (K, K, input_channels, hidden_channels),
                                     jnp.float32)

    def w_h(k):
        return s * jax.random.normal(k, (K, K, hidden_channels, hidden_channels),
                                     jnp.float32)

    def bias(k):
        return s * jax.random.normal(k, (hidden_channels,), jnp.float32)

    # Peephole weights: zeros in the PyTorch init_hidden, but made nonzero here
    # so the c*Wci / c*Wcf / cc*Wco paths are actually exercised by the test.
    def peep(k):
        return s * jax.random.normal(k, (hidden_channels, H, W), jnp.float32)

    return {
        "wxi": w_x(keys[0]), "wxf": w_x(keys[1]),
        "wxc": w_x(keys[2]), "wxo": w_x(keys[3]),
        "whi": w_h(keys[4]), "whf": w_h(keys[5]),
        "whc": w_h(keys[6]), "who": w_h(keys[7]),
        "bxi": bias(keys[8]), "bxf": bias(keys[9]),
        "bxc": bias(keys[10]), "bxo": bias(keys[11]),
        "wci": peep(keys[12]), "wcf": peep(keys[13]), "wco": peep(keys[14]),
    }


if __name__ == "__main__":
    B, Cin, H, W = 2, 4, 16, 16
    hidden, ksize = 32, 3

    key = jax.random.PRNGKey(0)
    k_x, k_h, k_c, k_p = jax.random.split(key, 4)

    # PyTorch-convention NCHW inputs.
    x = jax.random.normal(k_x, (B, Cin, H, W), jnp.float32)
    h = jax.random.normal(k_h, (B, hidden, H, W), jnp.float32)
    c = jax.random.normal(k_c, (B, hidden, H, W), jnp.float32)

    params = init_params(k_p, Cin, hidden, ksize, H, W)

    fwd = jax.jit(conv_lstm_cell_pallas)
    ch, cc = fwd(x, h, c, params)
    jax.block_until_ready((ch, cc))

    ch_ref, cc_ref = conv_lstm_cell_reference(x, h, c, params)
    assert ch.shape == (B, hidden, H, W) and cc.shape == (B, hidden, H, W)
    assert jnp.allclose(ch, ch_ref, atol=1e-4, rtol=1e-4), \
        float(jnp.max(jnp.abs(ch - ch_ref)))
    assert jnp.allclose(cc, cc_ref, atol=1e-4, rtol=1e-4), \
        float(jnp.max(jnp.abs(cc - cc_ref)))

    print("KERNEL_OK")
</pallas_src>

<mosaic_0001>
module attributes {stable_mosaic.version = 11 : i64} {
  func.func @kernel(%arg0: i32, %arg1: memref<40x512xf32, #tpu.memory_space<vmem>>, %arg2: memref<32x512xf32, #tpu.memory_space<vmem>>, %arg3: memref<128x328xf32, #tpu.memory_space<vmem>>, %arg4: memref<32x512xf32, #tpu.memory_space<vmem>>, %arg5: memref<9x512xf32, #tpu.memory_space<vmem>>, %arg6: memref<32x256xf32, #tpu.memory_space<vmem>>, %arg7: memref<32x256xf32, #tpu.memory_space<vmem>>, %arg8: memref<32x256xf32, #tpu.memory_space<vmem>>, %arg9: memref<32x512xf32, #tpu.memory_space<vmem>>, %arg10: memref<32x512xf32, #tpu.memory_space<vmem>>, %arg11: memref<328x512xf32, #tpu.memory_space<vmem>>, %arg12: memref<128x512xf32, #tpu.memory_space<vmem>>) attributes {dimension_semantics = [#tpu.dimension_semantics<parallel>], iteration_bounds = array<i64: 1>, scalar_prefetch = 0 : i64, scratch_operands = 2 : i64, tpu.core_type = #tpu.core_type<tc>, window_params = [{transform_indices = @transform_0, window_bounds = array<i64: 40, 512>}, {transform_indices = @transform_1, window_bounds = array<i64: 32, 512>}, {pipeline_mode = #tpu.pipeline_mode<synchronous>, transform_indices = @transform_2, window_bounds = array<i64: 128, 328>}, {transform_indices = @transform_3, window_bounds = array<i64: 32, 512>}, {pipeline_mode = #tpu.pipeline_mode<synchronous>, transform_indices = @transform_4, window_bounds = array<i64: 9, 512>}, {pipeline_mode = #tpu.pipeline_mode<synchronous>, transform_indices = @transform_5, window_bounds = array<i64: 32, 256>}, {pipeline_mode = #tpu.pipeline_mode<synchronous>, transform_indices = @transform_6, window_bounds = array<i64: 32, 256>}, {pipeline_mode = #tpu.pipeline_mode<synchronous>, transform_indices = @transform_7, window_bounds = array<i64: 32, 256>}, {transform_indices = @transform_8, window_bounds = array<i64: 32, 512>}, {transform_indices = @transform_9, window_bounds = array<i64: 32, 512>}]} {
    %c0 = arith.constant 0 : index
    %c0_0 = arith.constant 0 : index
    %0 = vector.load %arg1[%c0, %c0_0] : memref<40x512xf32, #tpu.memory_space<vmem>>, vector<40x512xf32>
    %c0_1 = arith.constant 0 : index
    %c0_2 = arith.constant 0 : index
    %1 = vector.load %arg11[%c0_1, %c0_2] : memref<328x512xf32, #tpu.memory_space<vmem>>, vector<40x512xf32>
    tpu.vector_store %arg11[%c0_1, %c0_2], %0 {strides = array<i32>} : memref<328x512xf32, #tpu.memory_space<vmem>>, vector<40x512xf32>,
    %c0_3 = arith.constant 0 : index
    %c0_4 = arith.constant 0 : index
    %2 = vector.load %arg2[%c0_3, %c0_4] : memref<32x512xf32, #tpu.memory_space<vmem>>, vector<32x512xf32>
    %c17_i32 = arith.constant 17 : i32
    %3 = tpu.dynamic_rotate %2 by %c17_i32 dim 1 : vector<32x512xf32>, i32 -> vector<32x512xf32>
    %c0_5 = arith.constant 0 : index
    %c0_6 = arith.constant 0 : index
    %4 = vector.load %arg5[%c0_5, %c0_6] : memref<9x512xf32, #tpu.memory_space<vmem>>, vector<1x512xf32>
    %5 = vector.broadcast %4 : vector<1x512xf32> to vector<32x512xf32>
    %6 = arith.mulf %3, %5 : vector<32x512xf32>
    %c40 = arith.constant 40 : index
    %c0_7 = arith.constant 0 : index
    %7 = vector.load %arg11[%c40, %c0_7] : memref<328x512xf32, #tpu.memory_space<vmem>>, vector<32x512xf32>
    tpu.vector_store %arg11[%c40, %c0_7], %6 {strides = array<i32>} : memref<328x512xf32, #tpu.memory_space<vmem>>, vector<32x512xf32>,
    %c16_i32 = arith.constant 16 : i32
    %8 = tpu.dynamic_rotate %2 by %c16_i32 dim 1 : vector<32x512xf32>, i32 -> vector<32x512xf32>
    %c1 = arith.constant 1 : index
    %c0_8 = arith.constant 0 : index
    %9 = vector.load %arg5[%c1, %c0_8] : memref<9x512xf32, #tpu.memory_space<vmem>>, vector<1x512xf32>
    %10 = vector.broadcast %9 : vector<1x512xf32> to vector<32x512xf32>
    %11 = arith.mulf %8, %10 : vector<32x512xf32>
    %c72 = arith.constant 72 : index
    %c0_9 = arith.constant 0 : index
    %12 = vector.load %arg11[%c72, %c0_9] : memref<328x512xf32, #tpu.memory_space<vmem>>, vector<32x512xf32>
    tpu.vector_store %arg11[%c72, %c0_9], %11 {strides = array<i32>} : memref<328x512xf32, #tpu.memory_space<vmem>>, vector<32x512xf32>,
    %c15_i32 = arith.constant 15 : i32
    %13 = tpu.dynamic_rotate %2 by %c15_i32 dim 1 : vector<32x512xf32>, i32 -> vector<32x512xf32>
    %c2 = arith.constant 2 : index
    %c0_10 = arith.constant 0 : index
    %14 = vector.load %arg5[%c2, %c0_10] : memref<9x512xf32, #tpu.memory_space<vmem>>, vector<1x512xf32>
    %15 = vector.broadcast %14 : vector<1x512xf32> to vector<32x512xf32>
    %16 = arith.mulf %13, %15 : vector<32x512xf32>
    %c104 = arith.constant 104 : index
    %c0_11 = arith.constant 0 : index
    %17 = vector.load %arg11[%c104, %c0_11] : memref<328x512xf32, #tpu.memory_space<vmem>>, vector<32x512xf32>
    tpu.vector_store %arg11[%c104, %c0_11], %16 {strides = array<i32>} : memref<328x512xf32, #tpu.memory_space<vmem>>, vector<32x512xf32>,
    %c1_i32 = arith.constant 1 : i32
    %18 = tpu.dynamic_rotate %2 by %c1_i32 dim 1 : vector<32x512xf32>, i32 -> vector<32x512xf32>
    %c3 = arith.constant 3 : index
    %c0_12 = arith.constant 0 : index
    %19 = vector.load %arg5[%c3, %c0_12] : memref<9x512xf32, #tpu.memory_space<vmem>>, vector<1x512xf32>
    %20 = vector.broadcast %19 : vector<1x512xf32> to vector<32x512xf32>
    %21 = arith.mulf %18, %20 : vector<32x512xf32>
    %c136 = arith.constant 136 : index
    %c0_13 = arith.constant 0 : index
    %22 = vector.load %arg11[%c136, %c0_13] : memref<328x512xf32, #tpu.memory_space<vmem>>, vector<32x512xf32>
    tpu.vector_store %arg11[%c136, %c0_13], %21 {strides = array<i32>} : memref<328x512xf32, #tpu.memory_space<vmem>>, vector<32x512xf32>,
    %c4 = arith.constant 4 : index
    %c0_14 = arith.constant 0 : index
    %23 = vector.load %arg5[%c4, %c0_14] : memref<9x512xf32, #tpu.memory_space<vmem>>, vector<1x512xf32>
    %24 = vector.broadcast %23 : vector<1x512xf32> to vector<32x512xf32>
    %25 = arith.mulf %2, %24 : vector<32x512xf32>
    %c168 = arith.constant 168 : index
    %c0_15 = arith.constant 0 : index
    %26 = vector.load %arg11[%c168, %c0_15] : memref<328x512xf32, #tpu.memory_space<vmem>>, vector<32x512xf32>
    tpu.vector_store %arg11[%c168, %c0_15], %25 {strides = array<i32>} : memref<328x512xf32, #tpu.memory_space<vmem>>, vector<32x512xf32>,
    %c511_i32 = arith.constant 511 : i32
    %27 = tpu.dynamic_rotate %2 by %c511_i32 dim 1 : vector<32x512xf32>, i32 -> vector<32x512xf32>
    %c5 = arith.constant 5 : index
    %c0_16 = arith.constant 0 : index
    %28 = vector.load %arg5[%c5, %c0_16] : memref<9x512xf32, #tpu.memory_space<vmem>>, vector<1x512xf32>
    %29 = vector.broadcast %28 : vector<1x512xf32> to vector<32x512xf32>
    %30 = arith.mulf %27, %29 : vector<32x512xf32>
    %c200 = arith.constant 200 : index
    %c0_17 = arith.constant 0 : index
    %31 = vector.load %arg11[%c200, %c0_17] : memref<328x512xf32, #tpu.memory_space<vmem>>, vector<32x512xf32>
    tpu.vector_store %arg11[%c200, %c0_17], %30 {strides = array<i32>} : memref<328x512xf32, #tpu.memory_space<vmem>>, vector<32x512xf32>,
    %c497_i32 = arith.constant 497 : i32
    %32 = tpu.dynamic_rotate %2 by %c497_i32 dim 1 : vector<32x512xf32>, i32 -> vector<32x512xf32>
    %c6 = arith.constant 6 : index
    %c0_18 = arith.constant 0 : index
    %33 = vector.load %arg5[%c6, %c0_18] : memref<9x512xf32, #tpu.memory_space<vmem>>, vector<1x512xf32>
    %34 = vector.broadcast %33 : vector<1x512xf32> to vector<32x512xf32>
    %35 = arith.mulf %32, %34 : vector<32x512xf32>
    %c232 = arith.constant 232 : index
    %c0_19 = arith.constant 0 : index
    %36 = vector.load %arg11[%c232, %c0_19] : memref<328x512xf32, #tpu.memory_space<vmem>>, vector<32x512xf32>
    tpu.vector_store %arg11[%c232, %c0_19], %35 {strides = array<i32>} : memref<328x512xf32, #tpu.memory_space<vmem>>, vector<32x512xf32>,
    %c496_i32 = arith.constant 496 : i32
    %37 = tpu.dynamic_rotate %2 by %c496_i32 dim 1 : vector<32x512xf32>, i32 -> vector<32x512xf32>
    %c7 = arith.constant 7 : index
    %c0_20 = arith.constant 0 : index
    %38 = vector.load %arg5[%c7, %c0_20] : memref<9x512xf32, #tpu.memory_space<vmem>>, vector<1x512xf32>
    %39 = vector.broadcast %38 : vector<1x512xf32> to vector<32x512xf32>
    %40 = arith.mulf %37, %39 : vector<32x512xf32>
    %c264 = arith.constant 264 : index
    %c0_21 = arith.constant 0 : index
    %41 = vector.load %arg11[%c264, %c0_21] : memref<328x512xf32, #tpu.memory_space<vmem>>, vector<32x512xf32>
    tpu.vector_store %arg11[%c264, %c0_21], %40 {strides = array<i32>} : memref<328x512xf32, #tpu.memory_space<vmem>>, vector<32x512xf32>,
    %c495_i32 = arith.constant 495 : i32
    %42 = tpu.dynamic_rotate %2 by %c495_i32 dim 1 : vector<32x512xf32>, i32 -> vector<32x512xf32>
    %c8 = arith.constant 8 : index
    %c0_22 = arith.constant 0 : index
    %43 = vector.load %arg5[%c8, %c0_22] : memref<9x512xf32, #tpu.memory_space<vmem>>, vector<1x512xf32>
    %44 = vector.broadcast %43 : vector<1x512xf32> to vector<32x512xf32>
    %45 = arith.mulf %42, %44 : vector<32x512xf32>
    %c296 = arith.constant 296 : index
    %c0_23 = arith.constant 0 : index
    %46 = vector.load %arg11[%c296, %c0_23] : memref<328x512xf32, #tpu.memory_space<vmem>>, vector<32x512xf32>
    tpu.vector_store %arg11[%c296, %c0_23], %45 {strides = array<i32>} : memref<328x512xf32, #tpu.memory_space<vmem>>, vector<32x512xf32>,
    %c0_24 = arith.constant 0 : index
    %c0_25 = arith.constant 0 : index
    %47 = vector.load %arg3[%c0_24, %c0_25] : memref<128x328xf32, #tpu.memory_space<vmem>>, vector<128x328xf32>
    %c0_26 = arith.constant 0 : index
    %c0_27 = arith.constant 0 : index
    %48 = vector.load %arg11[%c0_26, %c0_27] : memref<328x512xf32, #tpu.memory_space<vmem>>, vector<328x512xf32>
    %cst = arith.constant dense<0.000000e+00> : vector<128x512xf32>
    %49 = tpu.matmul %47, %48, %cst {dimension_numbers = #tpu.dot_dimension_numbers<[1], [0], [0], [1], [0, 0, 1, 1], [], []>} : vector<128x328xf32>, vector<328x512xf32>, vector<128x512xf32> -> vector<128x512xf32>
    %c0_28 = arith.constant 0 : index
    %c0_29 = arith.constant 0 : index
    %50 = vector.load %arg12[%c0_28, %c0_29] : memref<128x512xf32, #tpu.memory_space<vmem>>, vector<128x512xf32>
    tpu.vector_store %arg12[%c0_28, %c0_29], %49 {strides = array<i32>} : memref<128x512xf32, #tpu.memory_space<vmem>>, vector<128x512xf32>,
    %c0_i32 = arith.constant 0 : i32
    %c256_i32 = arith.constant 256 : i32
    %51 = arith.muli %c0_i32, %c256_i32 : i32
    %52 = tpu.assume_multiple %51, 256 : i32
    %c0_30 = arith.constant 0 : index
    %53 = arith.index_cast %52 : i32 to index
    %54 = vector.load %arg12[%c0_30, %53] : memref<128x512xf32, #tpu.memory_space<vmem>>, vector<32x256xf32>
    %c32 = arith.constant 32 : index
    %55 = arith.index_cast %52 : i32 to index
    %56 = vector.load %arg12[%c32, %55] : memref<128x512xf32, #tpu.memory_space<vmem>>, vector<32x256xf32>
    %c64 = arith.constant 64 : index
    %57 = arith.index_cast %52 : i32 to index
    %58 = vector.load %arg12[%c64, %57] : memref<128x512xf32, #tpu.memory_space<vmem>>, vector<32x256xf32>
    %c96 = arith.constant 96 : index
    %59 = arith.index_cast %52 : i32 to index
    %60 = vector.load %arg12[%c96, %59] : memref<128x512xf32, #tpu.memory_space<vmem>>, vector<32x256xf32>
    %c0_31 = arith.constant 0 : index
    %61 = arith.index_cast %52 : i32 to index
    %62 = vector.load %arg4[%c0_31, %61] : memref<32x512xf32, #tpu.memory_space<vmem>>, vector<32x256xf32>
    %c0_32 = arith.constant 0 : index
    %c0_33 = arith.constant 0 : index
    %63 = vector.load %arg6[%c0_32, %c0_33] : memref<32x256xf32, #tpu.memory_space<vmem>>, vector<32x256xf32>
    %64 = arith.mulf %62, %63 : vector<32x256xf32>
    %65 = arith.addf %54, %64 : vector<32x256xf32>
    %66 = arith.negf %65 : vector<32x256xf32>
    %67 = math.exp %66 : vector<32x256xf32>
    %cst_34 = arith.constant 1.000000e+00 : f32
    %68 = vector.broadcast %cst_34 : f32 to vector<32x256xf32>
    %69 = arith.addf %68, %67 : vector<32x256xf32>
    %70 = arith.divf %68, %69 : vector<32x256xf32>
    %c0_35 = arith.constant 0 : index
    %c0_36 = arith.constant 0 : index
    %71 = vector.load %arg7[%c0_35, %c0_36] : memref<32x256xf32, #tpu.memory_space<vmem>>, vector<32x256xf32>
    %72 = arith.mulf %62, %71 : vector<32x256xf32>
    %73 = arith.addf %56, %72 : vector<32x256xf32>
    %74 = arith.negf %73 : vector<32x256xf32>
    %75 = math.exp %74 : vector<32x256xf32>
    %cst_37 = arith.constant 1.000000e+00 : f32
    %76 = vector.broadcast %cst_37 : f32 to vector<32x256xf32>
    %77 = arith.addf %76, %75 : vector<32x256xf32>
    %78 = arith.divf %76, %77 : vector<32x256xf32>
    %79 = arith.mulf %78, %62 : vector<32x256xf32>
    %80 = math.tanh %58 : vector<32x256xf32>
    %81 = arith.mulf %70, %80 : vector<32x256xf32>
    %82 = arith.addf %79, %81 : vector<32x256xf32>
    %c0_38 = arith.constant 0 : index
    %c0_39 = arith.constant 0 : index
    %83 = vector.load %arg8[%c0_38, %c0_39] : memref<32x256xf32, #tpu.memory_space<vmem>>, vector<32x256xf32>
    %84 = arith.mulf %82, %83 : vector<32x256xf32>
    %85 = arith.addf %60, %84 : vector<32x256xf32>
    %86 = arith.negf %85 : vector<32x256xf32>
    %87 = math.exp %86 : vector<32x256xf32>
    %cst_40 = arith.constant 1.000000e+00 : f32
    %88 = vector.broadcast %cst_40 : f32 to vector<32x256xf32>
    %89 = arith.addf %88, %87 : vector<32x256xf32>
    %90 = arith.divf %88, %89 : vector<32x256xf32>
    %91 = math.tanh %82 : vector<32x256xf32>
    %92 = arith.mulf %90, %91 : vector<32x256xf32>
    %c0_41 = arith.constant 0 : index
    %93 = arith.index_cast %52 : i32 to index
    %94 = vector.load %arg9[%c0_41, %93] : memref<32x512xf32, #tpu.memory_space<vmem>>, vector<32x256xf32>
    tpu.vector_store %arg9[%c0_41, %93], %92 {strides = array<i32>} : memref<32x512xf32, #tpu.memory_space<vmem>>, vector<32x256xf32>,
    %c0_42 = arith.constant 0 : index
    %95 = arith.index_cast %52 : i32 to index
    %96 = vector.load %arg10[%c0_42, %95] : memref<32x512xf32, #tpu.memory_space<vmem>>, vector<32x256xf32>
    tpu.vector_store %arg10[%c0_42, %95], %82 {strides = array<i32>} : memref<32x512xf32, #tpu.memory_space<vmem>>, vector<32x256xf32>,
    %c1_i32_43 = arith.constant 1 : i32
    %c256_i32_44 = arith.constant 256 : i32
    %97 = arith.muli %c1_i32_43, %c256_i32_44 : i32
    %98 = tpu.assume_multiple %97, 256 : i32
    %c0_45 = arith.constant 0 : index
    %99 = arith.index_cast %98 : i32 to index
    %100 = vector.load %arg12[%c0_45, %99] : memref<128x512xf32, #tpu.memory_space<vmem>>, vector<32x256xf32>
    %c32_46 = arith.constant 32 : index
    %101 = arith.index_cast %98 : i32 to index
    %102 = vector.load %arg12[%c32_46, %101] : memref<128x512xf32, #tpu.memory_space<vmem>>, vector<32x256xf32>
    %c64_47 = arith.constant 64 : index
    %103 = arith.index_cast %98 : i32 to index
    %104 = vector.load %arg12[%c64_47, %103] : memref<128x512xf32, #tpu.memory_space<vmem>>, vector<32x256xf32>
    %c96_48 = arith.constant 96 : index
    %105 = arith.index_cast %98 : i32 to index
    %106 = vector.load %arg12[%c96_48, %105] : memref<128x512xf32, #tpu.memory_space<vmem>>, vector<32x256xf32>
    %c0_49 = arith.constant 0 : index
    %107 = arith.index_cast %98 : i32 to index
    %108 = vector.load %arg4[%c0_49, %107] : memref<32x512xf32, #tpu.memory_space<vmem>>, vector<32x256xf32>
    %c0_50 = arith.constant 0 : index
    %c0_51 = arith.constant 0 : index
    %109 = vector.load %arg6[%c0_50, %c0_51] : memref<32x256xf32, #tpu.memory_space<vmem>>, vector<32x256xf32>
    %110 = arith.mulf %108, %109 : vector<32x256xf32>
    %111 = arith.addf %100, %110 : vector<32x256xf32>
    %112 = arith.negf %111 : vector<32x256xf32>
    %113 = math.exp %112 : vector<32x256xf32>
    %cst_52 = arith.constant 1.000000e+00 : f32
    %114 = vector.broadcast %cst_52 : f32 to vector<32x256xf32>
    %115 = arith.addf %114, %113 : vector<32x256xf32>
    %116 = arith.divf %114, %115 : vector<32x256xf32>
    %c0_53 = arith.constant 0 : index
    %c0_54 = arith.constant 0 : index
    %117 = vector.load %arg7[%c0_53, %c0_54] : memref<32x256xf32, #tpu.memory_space<vmem>>, vector<32x256xf32>
    %118 = arith.mulf %108, %117 : vector<32x256xf32>
    %119 = arith.addf %102, %118 : vector<32x256xf32>
    %120 = arith.negf %119 : vector<32x256xf32>
    %121 = math.exp %120 : vector<32x256xf32>
    %cst_55 = arith.constant 1.000000e+00 : f32
    %122 = vector.broadcast %cst_55 : f32 to vector<32x256xf32>
    %123 = arith.addf %122, %121 : vector<32x256xf32>
    %124 = arith.divf %122, %123 : vector<32x256xf32>
    %125 = arith.mulf %124, %108 : vector<32x256xf32>
    %126 = math.tanh %104 : vector<32x256xf32>
    %127 = arith.mulf %116, %126 : vector<32x256xf32>
    %128 = arith.addf %125, %127 : vector<32x256xf32>
    %c0_56 = arith.constant 0 : index
    %c0_57 = arith.constant 0 : index
    %129 = vector.load %arg8[%c0_56, %c0_57] : memref<32x256xf32, #tpu.memory_space<vmem>>, vector<32x256xf32>
    %130 = arith.mulf %128, %129 : vector<32x256xf32>
    %131 = arith.addf %106, %130 : vector<32x256xf32>
    %132 = arith.negf %131 : vector<32x256xf32>
    %133 = math.exp %132 : vector<32x256xf32>
    %cst_58 = arith.constant 1.000000e+00 : f32
    %134 = vector.broadcast %cst_58 : f32 to vector<32x256xf32>
    %135 = arith.addf %134, %133 : vector<32x256xf32>
    %136 = arith.divf %134, %135 : vector<32x256xf32>
    %137 = math.tanh %128 : vector<32x256xf32>
    %138 = arith.mulf %136, %137 : vector<32x256xf32>
    %c0_59 = arith.constant 0 : index
    %139 = arith.index_cast %98 : i32 to index
    %140 = vector.load %arg9[%c0_59, %139] : memref<32x512xf32, #tpu.memory_space<vmem>>, vector<32x256xf32>
    tpu.vector_store %arg9[%c0_59, %139], %138 {strides = array<i32>} : memref<32x512xf32, #tpu.memory_space<vmem>>, vector<32x256xf32>,
    %c0_60 = arith.constant 0 : index
    %141 = arith.index_cast %98 : i32 to index
    %142 = vector.load %arg10[%c0_60, %141] : memref<32x512xf32, #tpu.memory_space<vmem>>, vector<32x256xf32>
    tpu.vector_store %arg10[%c0_60, %141], %128 {strides = array<i32>} : memref<32x512xf32, #tpu.memory_space<vmem>>, vector<32x256xf32>,
    %c2_i32 = arith.constant 2 : i32
    return
  }
  func.func @transform_0(%arg0: i32) -> (i32, i32) {
    %c0_i32 = arith.constant 0 : i32
    %c0_i32_0 = arith.constant 0 : i32
    return %c0_i32, %arg0 : i32, i32
  }
  func.func @transform_1(%arg0: i32) -> (i32, i32) {
    %c0_i32 = arith.constant 0 : i32
    %c0_i32_0 = arith.constant 0 : i32
    return %c0_i32, %arg0 : i32, i32
  }
  func.func @transform_2(%arg0: i32) -> (i32, i32) {
    %c0_i32 = arith.constant 0 : i32
    %c0_i32_0 = arith.constant 0 : i32
    %c0_i32_1 = arith.constant 0 : i32
    return %c0_i32, %c0_i32_0 : i32, i32
  }
  func.func @transform_3(%arg0: i32) -> (i32, i32) {
    %c0_i32 = arith.constant 0 : i32
    %c0_i32_0 = arith.constant 0 : i32
    return %c0_i32, %arg0 : i32, i32
  }
  func.func @transform_4(%arg0: i32) -> (i32, i32) {
    %c0_i32 = arith.constant 0 : i32
    %c0_i32_0 = arith.constant 0 : i32
    %c0_i32_1 = arith.constant 0 : i32
    return %c0_i32, %c0_i32_0 : i32, i32
  }
  func.func @transform_5(%arg0: i32) -> (i32, i32) {
    %c0_i32 = arith.constant 0 : i32
    %c0_i32_0 = arith.constant 0 : i32
    %c0_i32_1 = arith.constant 0 : i32
    return %c0_i32, %c0_i32_0 : i32, i32
  }
  func.func @transform_6(%arg0: i32) -> (i32, i32) {
    %c0_i32 = arith.constant 0 : i32
    %c0_i32_0 = arith.constant 0 : i32
    %c0_i32_1 = arith.constant 0 : i32
    return %c0_i32, %c0_i32_0 : i32, i32
  }
  func.func @transform_7(%arg0: i32) -> (i32, i32) {
    %c0_i32 = arith.constant 0 : i32
    %c0_i32_0 = arith.constant 0 : i32
    %c0_i32_1 = arith.constant 0 : i32
    return %c0_i32, %c0_i32_0 : i32, i32
  }
  func.func @transform_8(%arg0: i32) -> (i32, i32) {
    %c0_i32 = arith.constant 0 : i32
    %c0_i32_0 = arith.constant 0 : i32
    return %c0_i32, %arg0 : i32, i32
  }
  func.func @transform_9(%arg0: i32) -> (i32, i32) {
    %c0_i32 = arith.constant 0 : i32
    %c0_i32_0 = arith.constant 0 : i32
    return %c0_i32, %arg0 : i32, i32
  }
}

</mosaic_0001>

<bundles_post_ra>
// kernel: conv_lstm_cell_pallas.1
= control target key start
LH: loop header
LB: loop body
LE: loop exit
PB: predicated region body
PF: predicated region fallthrough
CT: control target
= control target key end

     0   :  { %s3197_s13 = smov 17   ;;  %s3198_s14 = smov 16   ;;  %v119_v40 = vlaneseq  ;;  %vm1187_vm8 = vcmask 588800   ;;  %s4960_s1 = inlined_call_operand.vmem [shape: f32[32,512], index: 1, kind: input, shape index: {}]   ;;  %s4961_s0 = inlined_call_operand.vmem [shape: f32[40,512], index: 0, kind: input, shape index: {}]   ;;  %s4962_s4 = inlined_call_operand.vmem [shape: f32[9,512], index: 4, kind: input, shape index: {}]   ;;  %s4963_s2 = inlined_call_operand.vmem [shape: f32[128,328], index: 2, kind: input, shape index: {}]   ;;  %s4964_s3 = inlined_call_operand.vmem [shape: f32[32,512], index: 3, kind: input, shape index: {}]   ;;  %s4965_s5 = inlined_call_operand.vmem [shape: f32[32,256], index: 5, kind: input, shape index: {}]   ;;  %s4966_s6 = inlined_call_operand.vmem [shape: f32[32,256], index: 6, kind: input, shape index: {}]   ;;  %s4967_s7 = inlined_call_operand.vmem [shape: f32[32,256], index: 7, kind: input, shape index: {}]   ;;  %s4968_s9 = inlined_call_operand.vmem [shape: f32[32,512], index: 9, kind: output, shape index: {1}]   ;;  %s4969_s8 = inlined_call_operand.vmem [shape: f32[32,512], index: 8, kind: output, shape index: {0}]  }
   0x1   :  { %v3259_v0 = vld [vmem:[%s4960_s1 + $0x10] sm:$0xff]  ;;  %v3264_v1 = vld [vmem:[%s4960_s1] sm:$0xff]  ;;  %v3273_v2 = vld [vmem:[%s4960_s1 + $0x18] sm:$0xff]  ;;  %s3202_s27 = smov 113   ;;  %s3203_s11 = smov 112  }
   0x2   :  { %103 = vrot.lane.b32.xlu1 %v3259_v0, %s3197_s13  ;;  %87 = vrot.lane.b32.xlu0 %v3264_v1, %s3197_s13  ;;  %v3278_v3 = vld [vmem:[%s4960_s1 + $0x8] sm:$0xff]  ;;  %v3287_v4 = vld [vmem:[%s4960_s1 + $0x40] sm:$0xff]  ;;  %v141_v41 = vshrl.u32 %v119_v40, 7  ;;  %v3464_v42 = vand.u32 127, %v119_v40 }
   0x3   :  { %v3292_v5 = vld [vmem:[%s4960_s1 + $0x20] sm:$0xff]  ;;  %v32_v6 = vld [vmem:[%s4961_s0 + $0x8] sm:$0xff]  ;;  %v34_v8 = vld [vmem:[%s4961_s0 + $0x18] sm:$0xff] }
   0x4   :  { %v36_v7 = vld [vmem:[%s4961_s0 + $0x28] sm:$0xff]  ;;  %v38_v10 = vld [vmem:[%s4961_s0 + $0x38] sm:$0xff]  ;;  %v31_v11 = vld [vmem:[%s4961_s0] sm:$0xff]  ;;  %v3466_v43 = vsub.s32 0, %v141_v41  ;;  %v3475_v45 = vsub.s32 3, %v141_v41  ;;  %v3477_v46 = vsub.s32 1, %v141_v41 }
   0x5   :  { %v2708_v9 = vpack.c.bf16 %v36_v7, %v32_v6  ;;  %v35_v12 = vld [vmem:[%s4961_s0 + $0x20] sm:$0xff]  ;;  %v3315_v13 = vld [vmem:[%s4960_s1 + $0x48] sm:$0xff]  ;;  %v2788_v15 = vpack.c.bf16 %v38_v10, %v34_v8  ;;  %v33_v17 = vld [vmem:[%s4961_s0 + $0x10] sm:$0xff]  ;;  %v3479_v47 = vsub.s32 2, %v141_v41  ;;  %vm121_vm0 = vcmp.lt.s32.totalorder %v3464_v42, 17 }
   0x6   :  { %111 = vrot.lane.b32.xlu1 %v3273_v2, %s3197_s13  ;;  %95 = vrot.lane.b32.xlu0 %v3278_v3, %s3197_s13  ;;  %v3320_v14 = vld [vmem:[%s4960_s1 + $0x28] sm:$0xff]  ;;  %v2710_v16 = vpack.c.bf16 %v35_v12, %v31_v11  ;;  %v37_v18 = vld [vmem:[%s4961_s0 + $0x30] sm:$0xff]  ;;  %vm224_vm1 = vcmp.lt.s32.totalorder %v3464_v42, 16  ;;  %vm328_vm2 = vcmp.lt.s32.totalorder %v3464_v42, 15  ;;  %vm432_vm3 = vcmp.lt.s32.totalorder %v3464_v42, 1 }
   0x7   :  { %v2790_v19 = vpack.c.bf16 %v37_v18, %v33_v17  ;;  %v40_v20 = vld [vmem:[%s4961_s0 + $0x48] sm:$0xff]  ;;  %2709 = vmatprep.subr.bf16.mxu0 %v2708_v9  ;;  %2789 = vmatprep.subr.bf16.mxu1 %v2788_v15  ;;  %v42_v23 = vld [vmem:[%s4961_s0 + $0x58] sm:$0xff]  ;;  %v39_v25 = vld [vmem:[%s4961_s0 + $0x40] sm:$0xff]  ;;  %vm591_vm4 = vcmp.lt.s32.totalorder %v3464_v42, 127  ;;  %vm695_vm5 = vcmp.lt.s32.totalorder %v3464_v42, 113  ;;  %vm799_vm6 = vcmp.lt.s32.totalorder %v3464_v42, 112 }
   0x8   :  { %v44_v21 = vld [vmem:[%s4961_s0 + $0x68] sm:$0xff]  ;;  %v46_v24 = vld [vmem:[%s4961_s0 + $0x78] sm:$0xff]  ;;  %2711 = vmatpush1.bf16.msra.mxu0 %v2710_v16  ;;  %v43_v27 = vld [vmem:[%s4961_s0 + $0x60] sm:$0xff]  ;;  %vm903_vm7 = vcmp.lt.s32.totalorder %v3464_v42, 111 }
   0x9   :  { %v2712_v22 = vpack.c.bf16 %v44_v21, %v40_v20  ;;  %2791 = vmatpush1.bf16.msra.mxu1 %v2790_v19  ;;  %v2792_v26 = vpack.c.bf16 %v46_v24, %v42_v23  ;;  %v41_v28 = vld [vmem:[%s4961_s0 + $0x50] sm:$0xff]  ;;  %v2714_v30 = vpack.c.bf16 %v43_v27, %v39_v25  ;;  %v3377_v34 = vld [vmem:[%s4960_s1 + $0x58] sm:$0xff]  ;;  %v3391_v36 = vld [vmem:[%s4960_s1 + $0x68] sm:$0xff] }
   0xa   :  { %91 = vrot.lane.b32.xlu1 %v3287_v4, %s3197_s13  ;;  %89 = vrot.lane.b32.xlu0 %v3292_v5, %s3197_s13  ;;  %v45_v29 = vld [vmem:[%s4961_s0 + $0x70] sm:$0xff]  ;;  %v3382_v35 = vld [vmem:[%s4960_s1 + $0x38] sm:$0xff] }
   0xb   :  { %2713 = vmatprep.subr.bf16.mxu0 %v2712_v22  ;;  %v2794_v31 = vpack.c.bf16 %v45_v29, %v41_v28  ;;  %v3363_v32 = vld [vmem:[%s4960_s1 + $0x50] sm:$0xff]  ;;  %2793 = vmatprep.subr.bf16.mxu1 %v2792_v26  ;;  %v3396_v37 = vld [vmem:[%s4960_s1 + $0x60] sm:$0xff]  ;;  %v3405_v38 = vld [vmem:[%s4960_s1 + $0x78] sm:$0xff] }
   0xc   :  { %v3368_v33 = vld [vmem:[%s4960_s1 + $0x30] sm:$0xff]  ;;  %2715 = vmatpush1.bf16.msra.mxu0 %v2714_v30  ;;  %v48_v56 = vld [vmem:[%s4961_s0 + $0x88] sm:$0xff]  ;;  %v50_v61 = vld [vmem:[%s4961_s0 + $0x98] sm:$0xff] }
   0xd   :  { %2795 = vmatpush1.bf16.msra.mxu1 %v2794_v31  ;;  %v3410_v39 = vld [vmem:[%s4960_s1 + $0x70] sm:$0xff]  ;;  %s3199_s1 = smov 15   ;;  %v47_v62 = vld [vmem:[%s4961_s0 + $0x80] sm:$0xff]  ;;  %v980_v42 = vld [vmem:[%s4963_s2 + $0x28] sm:$0xff] }
   0xe   :  { %99 = vrot.lane.b32.xlu1 %v3315_v13, %s3197_s13  ;;  %97 = vrot.lane.b32.xlu0 %v3320_v14, %s3197_s13  ;;  %v138_v44 = vld [vmem:[%s4962_s4] ss:$8 sm:$0xf] }
   0xf   :  { %v3482_v50 = vrot.slane %v138_v44, %v3466_v43  ;;  %v3490_v51 = vrot.slane %v138_v44, %v3475_v45  ;;  %v3493_v52 = vrot.slane %v138_v44, %v3477_v46  ;;  %v3496_v53 = vrot.slane %v138_v44, %v3479_v47  ;;  %v49_v63 = vld [vmem:[%s4961_s0 + $0x90] sm:$0xff]  ;;  %s3201_s0 = smov 127  }
  0x12   :  { %107 = vrot.lane.b32.xlu1 %v3363_v32, %s3197_s13  ;;  %105 = vrot.lane.b32.xlu0 %v3368_v33, %s3197_s13 }
  0x16   :  { %115 = vrot.lane.b32.xlu1 %v3377_v34, %s3197_s13  ;;  %113 = vrot.lane.b32.xlu0 %v3382_v35, %s3197_s13 }
  0x1a   :  { %101 = vrot.lane.b32.xlu1 %v3391_v36, %s3197_s13  ;;  %93 = vrot.lane.b32.xlu0 %v3396_v37, %s3197_s13 }
  0x1e   :  { %117 = vrot.lane.b32.xlu1 %v3405_v38, %s3197_s13  ;;  %109 = vrot.lane.b32.xlu0 %v3410_v39, %s3197_s13  ;;  %s3200_s13 = smov 1  }
  0x22   :  { %200 = vrot.lane.b32.xlu1 %v3278_v3, %s3198_s14  ;;  %192 = vrot.lane.b32.xlu0 %v3264_v1, %s3198_s14 }
  0x26   :  { %216 = vrot.lane.b32.xlu1 %v3273_v2, %s3198_s14  ;;  %208 = vrot.lane.b32.xlu0 %v3259_v0, %s3198_s14 }
  0x2a   :  { %196 = vrot.lane.b32.xlu1 %v3287_v4, %s3198_s14  ;;  %194 = vrot.lane.b32.xlu0 %v3292_v5, %s3198_s14 }
  0x2e   :  { %204 = vrot.lane.b32.xlu1 %v3315_v13, %s3198_s14  ;;  %202 = vrot.lane.b32.xlu0 %v3320_v14, %s3198_s14 }
  0x32   :  { %212 = vrot.lane.b32.xlu1 %v3363_v32, %s3198_s14  ;;  %210 = vrot.lane.b32.xlu0 %v3368_v33, %s3198_s14 }
  0x36   :  { %220 = vrot.lane.b32.xlu1 %v3377_v34, %s3198_s14  ;;  %218 = vrot.lane.b32.xlu0 %v3382_v35, %s3198_s14 }
  0x3a   :  { %206 = vrot.lane.b32.xlu1 %v3391_v36, %s3198_s14  ;;  %198 = vrot.lane.b32.xlu0 %v3396_v37, %s3198_s14 }
  0x3e   :  { %222 = vrot.lane.b32.xlu1 %v3405_v38, %s3198_s14  ;;  %214 = vrot.lane.b32.xlu0 %v3410_v39, %s3198_s14 }
  0x42   :  { %304 = vrot.lane.b32.xlu1 %v3278_v3, %s3199_s1  ;;  %296 = vrot.lane.b32.xlu0 %v3264_v1, %s3199_s1 }
  0x46   :  { %320 = vrot.lane.b32.xlu1 %v3273_v2, %s3199_s1  ;;  %312 = vrot.lane.b32.xlu0 %v3259_v0, %s3199_s1 }
  0x4a   :  { %300 = vrot.lane.b32.xlu1 %v3287_v4, %s3199_s1  ;;  %298 = vrot.lane.b32.xlu0 %v3292_v5, %s3199_s1 }
  0x4e   :  { %308 = vrot.lane.b32.xlu1 %v3315_v13, %s3199_s1  ;;  %306 = vrot.lane.b32.xlu0 %v3320_v14, %s3199_s1 }
  0x52   :  { %316 = vrot.lane.b32.xlu1 %v3363_v32, %s3199_s1  ;;  %314 = vrot.lane.b32.xlu0 %v3368_v33, %s3199_s1 }
  0x56   :  { %324 = vrot.lane.b32.xlu1 %v3377_v34, %s3199_s1  ;;  %322 = vrot.lane.b32.xlu0 %v3382_v35, %s3199_s1 }
  0x5a   :  { %310 = vrot.lane.b32.xlu1 %v3391_v36, %s3199_s1  ;;  %302 = vrot.lane.b32.xlu0 %v3396_v37, %s3199_s1 }
  0x5e   :  { %326 = vrot.lane.b32.xlu1 %v3405_v38, %s3199_s1  ;;  %318 = vrot.lane.b32.xlu0 %v3410_v39, %s3199_s1  ;;  %s3204_s1 = smov 111  }
  0x62   :  { %408 = vrot.lane.b32.xlu1 %v3278_v3, %s3200_s13  ;;  %400 = vrot.lane.b32.xlu0 %v3264_v1, %s3200_s13 }
  0x66   :  { %424 = vrot.lane.b32.xlu1 %v3273_v2, %s3200_s13  ;;  %416 = vrot.lane.b32.xlu0 %v3259_v0, %s3200_s13 }
  0x6a   :  { %404 = vrot.lane.b32.xlu1 %v3287_v4, %s3200_s13  ;;  %402 = vrot.lane.b32.xlu0 %v3292_v5, %s3200_s13 }
  0x6e   :  { %412 = vrot.lane.b32.xlu1 %v3315_v13, %s3200_s13  ;;  %410 = vrot.lane.b32.xlu0 %v3320_v14, %s3200_s13 }
  0x72   :  { %420 = vrot.lane.b32.xlu1 %v3363_v32, %s3200_s13  ;;  %418 = vrot.lane.b32.xlu0 %v3368_v33, %s3200_s13 }
  0x74   :  { %v104_v48 = vpop.permute.xlu1 %103  ;;  %v88_v49 = vpop.permute.xlu0 %87 }
  0x76   :  { %428 = vrot.lane.b32.xlu1 %v3377_v34, %s3200_s13  ;;  %426 = vrot.lane.b32.xlu0 %v3382_v35, %s3200_s13 }
  0x78   :  { %v112_v54 = vpop.permute.xlu1 %111  ;;  %v96_v55 = vpop.permute.xlu0 %95 }
  0x79   :  { %v122_v57 = vsel %vm121_vm0, %v104_v48, %v112_v54  ;;  %v134_v58 = vsel %vm121_vm0, %v112_v54, %v88_v49  ;;  %v126_v59 = vsel %vm121_vm0, %v96_v55, %v104_v48  ;;  %v130_v60 = vsel %vm121_vm0, %v88_v49, %v96_v55 }
  0x7a   :  { %v160_v6 = vmul.f32 %v3482_v50, %v134_v58  ;;  %v163_v7 = vmul.f32 %v3490_v51, %v122_v57  ;;  %v161_v8 = vmul.f32 %v3493_v52, %v130_v60  ;;  %v162_v9 = vmul.f32 %v3496_v53, %v126_v59  ;;  %414 = vrot.lane.b32.xlu1 %v3391_v36, %s3200_s13 }
  0x7b   :  { %406 = vrot.lane.b32.xlu0 %v3396_v37, %s3200_s13 }
  0x7c   :  { %v92_v10 = vpop.permute.xlu1 %91  ;;  %v90_v11 = vpop.permute.xlu0 %89  ;;  %v2716_v12 = vpack.c.bf16 %v161_v8, %v48_v56  ;;  %v2796_v15 = vpack.c.bf16 %v163_v7, %v50_v61  ;;  %v2718_v16 = vpack.c.bf16 %v160_v6, %v47_v62  ;;  %v2798_v17 = vpack.c.bf16 %v162_v9, %v49_v63  ;;  %v2596_v63 = vld [vmem:[%s4962_s4 + $0x1] ss:$8 sm:$0xf] }
  0x7d   :  { %v3577_v8 = vrot.slane %v2596_v63, %v3477_v46 }
  0x7e   :  { %430 = vrot.lane.b32.xlu1 %v3405_v38, %s3200_s13  ;;  %2717 = vmatprep.subr.bf16.mxu0 %v2716_v12  ;;  %v3584_v12 = vrot.slane %v2596_v63, %v3466_v43 }
  0x7f   :  { %422 = vrot.lane.b32.xlu0 %v3410_v39, %s3200_s13  ;;  %2797 = vmatprep.subr.bf16.mxu1 %v2796_v15 }
  0x80   :  { %2719 = vmatpush1.bf16.msra.mxu0 %v2718_v16  ;;  %2799 = vmatpush1.bf16.msra.mxu1 %v2798_v17  ;;  %v100_v18 = vpop.permute.xlu1 %99  ;;  %v98_v19 = vpop.permute.xlu0 %97 }
  0x81   :  { %v132_v20 = vsel %vm121_vm0, %v92_v10, %v100_v18  ;;  %v131_v21 = vsel %vm121_vm0, %v90_v11, %v98_v19 }
  0x82   :  { %v169_v22 = vmul.f32 %v3493_v52, %v132_v20  ;;  %v165_v23 = vmul.f32 %v3493_v52, %v131_v21  ;;  %567 = vrot.lane.b32.xlu1 %v3278_v3, %s3201_s0 }
  0x83   :  { %559 = vrot.lane.b32.xlu0 %v3264_v1, %s3201_s0 }
  0x84   :  { %v108_v24 = vpop.permute.xlu1 %107  ;;  %v106_v25 = vpop.permute.xlu0 %105  ;;  %v2720_v26 = vpack.c.bf16 %v169_v22, %v165_v23  ;;  %v3602_v22 = vrot.slane %v2596_v63, %v3475_v45 }
  0x85   :  { %v128_v27 = vsel %vm121_vm0, %v100_v18, %v108_v24  ;;  %v127_v28 = vsel %vm121_vm0, %v98_v19, %v106_v25  ;;  %v3593_v18 = vrot.slane %v2596_v63, %v3479_v47 }
  0x86   :  { %583 = vrot.lane.b32.xlu1 %v3273_v2, %s3201_s0  ;;  %2721 = vmatprep.subr.bf16.mxu0 %v2720_v26  ;;  %v170_v29 = vmul.f32 %v3496_v53, %v128_v27  ;;  %v166_v30 = vmul.f32 %v3496_v53, %v127_v28 }
  0x87   :  { %575 = vrot.lane.b32.xlu0 %v3259_v0, %s3201_s0 }
  0x88   :  { %v116_v31 = vpop.permute.xlu1 %115  ;;  %v114_v40 = vpop.permute.xlu0 %113  ;;  %v2802_v62 = vpack.c.bf16 %v170_v29, %v166_v30 }
  0x89   :  { %v124_v41 = vsel %vm121_vm0, %v108_v24, %v116_v31  ;;  %v136_v44 = vsel %vm121_vm0, %v116_v31, %v92_v10  ;;  %v123_v48 = vsel %vm121_vm0, %v106_v25, %v114_v40  ;;  %v135_v49 = vsel %vm121_vm0, %v114_v40, %v90_v11 }
  0x8a   :  { %v168_v54 = vmul.f32 %v3482_v50, %v136_v44  ;;  %v171_v55 = vmul.f32 %v3490_v51, %v124_v41  ;;  %v164_v56 = vmul.f32 %v3482_v50, %v135_v49  ;;  %v167_v57 = vmul.f32 %v3490_v51, %v123_v48  ;;  %563 = vrot.lane.b32.xlu1 %v3287_v4, %s3201_s0 }
  0x8b   :  { %561 = vrot.lane.b32.xlu0 %v3292_v5, %s3201_s0 }
  0x8c   :  { %v102_v58 = vpop.permute.xlu1 %101  ;;  %v94_v59 = vpop.permute.xlu0 %93  ;;  %v2722_v60 = vpack.c.bf16 %v168_v54, %v164_v56  ;;  %v2800_v61 = vpack.c.bf16 %v171_v55, %v167_v57 }
  0x8d   :  { %v133_v9 = vsel %vm121_vm0, %v94_v59, %v102_v58 }
  0x8e   :  { %571 = vrot.lane.b32.xlu1 %v3315_v13, %s3201_s0  ;;  %2723 = vmatpush1.bf16.msra.mxu0 %v2722_v60  ;;  %v173_v19 = vmul.f32 %v3493_v52, %v133_v9 }
  0x8f   :  { %569 = vrot.lane.b32.xlu0 %v3320_v14, %s3201_s0  ;;  %2801 = vmatprep.subr.bf16.mxu1 %v2800_v61 }
  0x90   :  { %2803 = vmatpush1.bf16.msra.mxu1 %v2802_v62  ;;  %v118_v6 = vpop.permute.xlu1 %117  ;;  %v110_v7 = vpop.permute.xlu0 %109 }
  0x91   :  { %v137_v15 = vsel %vm121_vm0, %v118_v6, %v94_v59  ;;  %v129_v16 = vsel %vm121_vm0, %v102_v58, %v110_v7  ;;  %v125_v20 = vsel %vm121_vm0, %v110_v7, %v118_v6 }
  0x92   :  { %579 = vrot.lane.b32.xlu1 %v3363_v32, %s3201_s0  ;;  %v172_v23 = vmul.f32 %v3482_v50, %v137_v15  ;;  %v174_v24 = vmul.f32 %v3496_v53, %v129_v16  ;;  %v175_v27 = vmul.f32 %v3490_v51, %v125_v20 }
  0x93   :  { %577 = vrot.lane.b32.xlu0 %v3368_v33, %s3201_s0 }
  0x94   :  { %v201_v10 = vpop.permute.xlu1 %200  ;;  %v193_v11 = vpop.permute.xlu0 %192 }
  0x95   :  { %v233_v17 = vsel %vm224_vm1, %v193_v11, %v201_v10 }
  0x96   :  { %v265_v21 = vmul.f32 %v3577_v8, %v233_v17  ;;  %587 = vrot.lane.b32.xlu1 %v3377_v34, %s3201_s0 }
  0x97   :  { %585 = vrot.lane.b32.xlu0 %v3382_v35, %s3201_s0 }
  0x98   :  { %v217_v25 = vpop.permute.xlu1 %216  ;;  %v209_v52 = vpop.permute.xlu0 %208  ;;  %v2724_v26 = vpack.c.bf16 %v265_v21, %v173_v19 }
  0x99   :  { %v237_v28 = vsel %vm224_vm1, %v217_v25, %v193_v11  ;;  %v225_v29 = vsel %vm224_vm1, %v209_v52, %v217_v25  ;;  %v229_v30 = vsel %vm224_vm1, %v201_v10, %v209_v52 }
  0x9a   :  { %v264_v31 = vmul.f32 %v3584_v12, %v237_v28  ;;  %v266_v50 = vmul.f32 %v3593_v18, %v229_v30  ;;  %v267_v53 = vmul.f32 %v3602_v22, %v225_v29  ;;  %573 = vrot.lane.b32.xlu1 %v3391_v36, %s3201_s0  ;;  %2725 = vmatprep.subr.bf16.mxu0 %v2724_v26  ;;  %v2597_v28 = vld [vmem:[%s4962_s4 + $0x2] ss:$8 sm:$0xf] }
  0x9b   :  { %565 = vrot.lane.b32.xlu0 %v3396_v37, %s3201_s0 }
  0x9c   :  { %v197_v51 = vpop.permute.xlu1 %196  ;;  %v195_v40 = vpop.permute.xlu0 %194  ;;  %v2726_v41 = vpack.c.bf16 %v264_v31, %v172_v23  ;;  %v2804_v44 = vpack.c.bf16 %v267_v53, %v175_v27  ;;  %v2806_v48 = vpack.c.bf16 %v266_v50, %v174_v24  ;;  %v3673_v31 = vrot.slane %v2597_v28, %v3477_v46 }
  0x9e   :  { %589 = vrot.lane.b32.xlu1 %v3405_v38, %s3201_s0  ;;  %2727 = vmatpush1.bf16.msra.mxu0 %v2726_v41  ;;  %v3683_v41 = vrot.slane %v2597_v28, %v3479_v47 }
  0x9f   :  { %581 = vrot.lane.b32.xlu0 %v3410_v39, %s3201_s0  ;;  %2805 = vmatprep.subr.bf16.mxu1 %v2804_v44 }
  0xa0   :  { %2807 = vmatpush1.bf16.msra.mxu1 %v2806_v48  ;;  %v205_v49 = vpop.permute.xlu1 %204  ;;  %v203_v54 = vpop.permute.xlu0 %202 }
  0xa1   :  { %v235_v55 = vsel %vm224_vm1, %v197_v51, %v205_v49  ;;  %v234_v56 = vsel %vm224_vm1, %v195_v40, %v203_v54 }
  0xa2   :  { %v273_v57 = vmul.f32 %v3577_v8, %v235_v55  ;;  %v269_v58 = vmul.f32 %v3577_v8, %v234_v56  ;;  %671 = vrot.lane.b32.xlu1 %v3278_v3, %s3202_s27  ;;  %v976_v55 = vld [vmem:[%s4963_s2 + $0x8] sm:$0xff] }
  0xa3   :  { %663 = vrot.lane.b32.xlu0 %v3264_v1, %s3202_s27  ;;  %1300 = vmatprep.mubr.f32.mxu0 %v976_v55 }
  0xa4   :  { %v213_v59 = vpop.permute.xlu1 %212  ;;  %v211_v60 = vpop.permute.xlu0 %210  ;;  %v2728_v61 = vpack.c.bf16 %v273_v57, %v269_v58  ;;  %1622 = vmatprep.mubr.f32.mxu1 %v976_v55 }
  0xa5   :  { %v231_v62 = vsel %vm224_vm1, %v205_v49, %v213_v59  ;;  %v230_v63 = vsel %vm224_vm1, %v203_v54, %v211_v60  ;;  %v3692_v54 = vrot.slane %v2597_v28, %v3475_v45 }
  0xa6   :  { %687 = vrot.lane.b32.xlu1 %v3273_v2, %s3202_s27  ;;  %2729 = vmatprep.subr.bf16.mxu0 %v2728_v61  ;;  %v274_v6 = vmul.f32 %v3593_v18, %v231_v62  ;;  %v270_v7 = vmul.f32 %v3593_v18, %v230_v63 }
  0xa7   :  { %679 = vrot.lane.b32.xlu0 %v3259_v0, %s3202_s27 }
  0xa8   :  { %v221_v9 = vpop.permute.xlu1 %220  ;;  %v219_v10 = vpop.permute.xlu0 %218  ;;  %v2810_v27 = vpack.c.bf16 %v274_v6, %v270_v7 }
  0xa9   :  { %v227_v11 = vsel %vm224_vm1, %v213_v59, %v221_v9  ;;  %v239_v15 = vsel %vm224_vm1, %v221_v9, %v197_v51  ;;  %v226_v16 = vsel %vm224_vm1, %v211_v60, %v219_v10  ;;  %v238_v17 = vsel %vm224_vm1, %v219_v10, %v195_v40 }
  0xaa   :  { %v272_v19 = vmul.f32 %v3584_v12, %v239_v15  ;;  %v275_v20 = vmul.f32 %v3602_v22, %v227_v11  ;;  %v268_v21 = vmul.f32 %v3584_v12, %v238_v17  ;;  %v271_v23 = vmul.f32 %v3602_v22, %v226_v16  ;;  %667 = vrot.lane.b32.xlu1 %v3287_v4, %s3202_s27 }
  0xab   :  { %665 = vrot.lane.b32.xlu0 %v3292_v5, %s3202_s27  ;;  %v3680_v40 = vrot.slane %v2597_v28, %v3466_v43 }
  0xac   :  { %v207_v24 = vpop.permute.xlu1 %206  ;;  %v199_v25 = vpop.permute.xlu0 %198  ;;  %v2730_v52 = vpack.c.bf16 %v272_v19, %v268_v21  ;;  %v2808_v26 = vpack.c.bf16 %v275_v20, %v271_v23 }
  0xad   :  { %v236_v50 = vsel %vm224_vm1, %v199_v25, %v207_v24 }
  0xae   :  { %675 = vrot.lane.b32.xlu1 %v3315_v13, %s3202_s27  ;;  %2731 = vmatpush1.bf16.msra.mxu0 %v2730_v52  ;;  %v277_v56 = vmul.f32 %v3577_v8, %v236_v50 }
  0xaf   :  { %673 = vrot.lane.b32.xlu0 %v3320_v14, %s3202_s27  ;;  %2809 = vmatprep.subr.bf16.mxu1 %v2808_v26 }
  0xb0   :  { %2811 = vmatpush1.bf16.msra.mxu1 %v2810_v27  ;;  %v223_v29 = vpop.permute.xlu1 %222  ;;  %v215_v30 = vpop.permute.xlu0 %214 }
  0xb1   :  { %v240_v44 = vsel %vm224_vm1, %v223_v29, %v199_v25  ;;  %v232_v48 = vsel %vm224_vm1, %v207_v24, %v215_v30  ;;  %v228_v57 = vsel %vm224_vm1, %v215_v30, %v223_v29 }
  0xb2   :  { %683 = vrot.lane.b32.xlu1 %v3363_v32, %s3202_s27  ;;  %v276_v59 = vmul.f32 %v3584_v12, %v240_v44  ;;  %v278_v60 = vmul.f32 %v3593_v18, %v232_v48  ;;  %v279_v63 = vmul.f32 %v3602_v22, %v228_v57 }
  0xb3   :  { %681 = vrot.lane.b32.xlu0 %v3368_v33, %s3202_s27 }
  0xb4   :  { %v305_v53 = vpop.permute.xlu1 %304  ;;  %v297_v51 = vpop.permute.xlu0 %296 }
  0xb5   :  { %v337_v49 = vsel %vm328_vm2, %v297_v51, %v305_v53 }
  0xb6   :  { %v369_v58 = vmul.f32 %v3673_v31, %v337_v49  ;;  %691 = vrot.lane.b32.xlu1 %v3377_v34, %s3202_s27 }
  0xb7   :  { %689 = vrot.lane.b32.xlu0 %v3382_v35, %s3202_s27 }
  0xb8   :  { %v321_v61 = vpop.permute.xlu1 %320  ;;  %v313_v62 = vpop.permute.xlu0 %312  ;;  %v2732_v8 = vpack.c.bf16 %v369_v58, %v277_v56 }
  0xb9   :  { %v341_v6 = vsel %vm328_vm2, %v321_v61, %v297_v51  ;;  %v329_v7 = vsel %vm328_vm2, %v313_v62, %v321_v61  ;;  %v333_v9 = vsel %vm328_vm2, %v305_v53, %v313_v62 }
  0xba   :  { %v368_v10 = vmul.f32 %v3680_v40, %v341_v6  ;;  %v370_v12 = vmul.f32 %v3683_v41, %v333_v9  ;;  %v371_v18 = vmul.f32 %v3692_v54, %v329_v7  ;;  %677 = vrot.lane.b32.xlu1 %v3391_v36, %s3202_s27  ;;  %2733 = vmatprep.subr.bf16.mxu0 %v2732_v8  ;;  %v2598_v6 = vld [vmem:[%s4962_s4 + $0x3] ss:$8 sm:$0xf] }
  0xbb   :  { %669 = vrot.lane.b32.xlu0 %v3396_v37, %s3202_s27 }
  0xbc   :  { %v301_v22 = vpop.permute.xlu1 %300  ;;  %v299_v11 = vpop.permute.xlu0 %298  ;;  %v2734_v15 = vpack.c.bf16 %v368_v10, %v276_v59  ;;  %v2812_v16 = vpack.c.bf16 %v371_v18, %v279_v63  ;;  %v2814_v17 = vpack.c.bf16 %v370_v12, %v278_v60  ;;  %v3772_v10 = vrot.slane %v2598_v6, %v3477_v46 }
  0xbe   :  { %693 = vrot.lane.b32.xlu1 %v3405_v38, %s3202_s27  ;;  %2735 = vmatpush1.bf16.msra.mxu0 %v2734_v15 }
  0xbf   :  { %685 = vrot.lane.b32.xlu0 %v3410_v39, %s3202_s27  ;;  %2813 = vmatprep.subr.bf16.mxu1 %v2812_v16 }
  0xc0   :  { %2815 = vmatpush1.bf16.msra.mxu1 %v2814_v17  ;;  %v309_v19 = vpop.permute.xlu1 %308  ;;  %v307_v20 = vpop.permute.xlu0 %306 }
  0xc1   :  { %v339_v21 = vsel %vm328_vm2, %v301_v22, %v309_v19  ;;  %v338_v23 = vsel %vm328_vm2, %v299_v11, %v307_v20 }
  0xc2   :  { %v377_v24 = vmul.f32 %v3673_v31, %v339_v21  ;;  %v373_v25 = vmul.f32 %v3673_v31, %v338_v23  ;;  %775 = vrot.lane.b32.xlu1 %v3278_v3, %s3203_s11 }
  0xc3   :  { %767 = vrot.lane.b32.xlu0 %v3264_v1, %s3203_s11 }
  0xc4   :  { %v317_v52 = vpop.permute.xlu1 %316  ;;  %v315_v26 = vpop.permute.xlu0 %314  ;;  %v2736_v27 = vpack.c.bf16 %v377_v24, %v373_v25  ;;  %v3797_v24 = vrot.slane %v2598_v6, %v3475_v45 }
  0xc5   :  { %v335_v28 = vsel %vm328_vm2, %v309_v19, %v317_v52  ;;  %v334_v29 = vsel %vm328_vm2, %v307_v20, %v315_v26  ;;  %v3788_v19 = vrot.slane %v2598_v6, %v3479_v47 }
  0xc6   :  { %791 = vrot.lane.b32.xlu1 %v3273_v2, %s3203_s11  ;;  %2737 = vmatprep.subr.bf16.mxu0 %v2736_v27  ;;  %v378_v30 = vmul.f32 %v3683_v41, %v335_v28  ;;  %v374_v50 = vmul.f32 %v3683_v41, %v334_v29 }
  0xc7   :  { %783 = vrot.lane.b32.xlu0 %v3259_v0, %s3203_s11 }
  0xc8   :  { %v325_v53 = vpop.permute.xlu1 %324  ;;  %v323_v51 = vpop.permute.xlu0 %322  ;;  %v2818_v63 = vpack.c.bf16 %v378_v30, %v374_v50 }
  0xc9   :  { %v331_v44 = vsel %vm328_vm2, %v317_v52, %v325_v53  ;;  %v343_v48 = vsel %vm328_vm2, %v325_v53, %v301_v22  ;;  %v330_v49 = vsel %vm328_vm2, %v315_v26, %v323_v51  ;;  %v342_v55 = vsel %vm328_vm2, %v323_v51, %v299_v11 }
  0xca   :  { %v376_v56 = vmul.f32 %v3680_v40, %v343_v48  ;;  %v379_v57 = vmul.f32 %v3692_v54, %v331_v44  ;;  %v372_v58 = vmul.f32 %v3680_v40, %v342_v55  ;;  %v375_v59 = vmul.f32 %v3692_v54, %v330_v49  ;;  %771 = vrot.lane.b32.xlu1 %v3287_v4, %s3203_s11 }
  0xcb   :  { %769 = vrot.lane.b32.xlu0 %v3292_v5, %s3203_s11  ;;  %v3779_v11 = vrot.slane %v2598_v6, %v3466_v43 }
  0xcc   :  { %v311_v60 = vpop.permute.xlu1 %310  ;;  %v303_v61 = vpop.permute.xlu0 %302  ;;  %v2738_v62 = vpack.c.bf16 %v376_v56, %v372_v58  ;;  %v2816_v8 = vpack.c.bf16 %v379_v57, %v375_v59 }
  0xcd   :  { %v340_v12 = vsel %vm328_vm2, %v303_v61, %v311_v60 }
  0xce   :  { %779 = vrot.lane.b32.xlu1 %v3315_v13, %s3203_s11  ;;  %2739 = vmatpush1.bf16.msra.mxu0 %v2738_v62  ;;  %v381_v20 = vmul.f32 %v3673_v31, %v340_v12 }
  0xcf   :  { %777 = vrot.lane.b32.xlu0 %v3320_v14, %s3203_s11  ;;  %2817 = vmatprep.subr.bf16.mxu1 %v2816_v8 }
  0xd0   :  { %2819 = vmatpush1.bf16.msra.mxu1 %v2818_v63  ;;  %v327_v7 = vpop.permute.xlu1 %326  ;;  %v319_v9 = vpop.permute.xlu0 %318 }
  0xd1   :  { %v344_v15 = vsel %vm328_vm2, %v327_v7, %v303_v61  ;;  %v336_v16 = vsel %vm328_vm2, %v311_v60, %v319_v9  ;;  %v332_v21 = vsel %vm328_vm2, %v319_v9, %v327_v7  ;;  %v2599_v7 = vld [vmem:[%s4962_s4 + $0x4] ss:$8 sm:$0xf] }
  0xd2   :  { %787 = vrot.lane.b32.xlu1 %v3363_v32, %s3203_s11  ;;  %v380_v25 = vmul.f32 %v3680_v40, %v344_v15  ;;  %v382_v52 = vmul.f32 %v3683_v41, %v336_v16  ;;  %v383_v28 = vmul.f32 %v3692_v54, %v332_v21  ;;  %v3845_v15 = vrot.slane %v2599_v7, %v3477_v46 }
  0xd3   :  { %785 = vrot.lane.b32.xlu0 %v3368_v33, %s3203_s11 }
  0xd4   :  { %v409_v18 = vpop.permute.xlu1 %408  ;;  %v401_v22 = vpop.permute.xlu0 %400 }
  0xd5   :  { %v441_v17 = vsel %vm432_vm3, %v401_v22, %v409_v18 }
  0xd6   :  { %v473_v23 = vmul.f32 %v3772_v10, %v441_v17  ;;  %795 = vrot.lane.b32.xlu1 %v3377_v34, %s3203_s11 }
  0xd7   :  { %793 = vrot.lane.b32.xlu0 %v3382_v35, %s3203_s11 }
  0xd8   :  { %v425_v26 = vpop.permute.xlu1 %424  ;;  %v417_v31 = vpop.permute.xlu0 %416  ;;  %v2740_v27 = vpack.c.bf16 %v473_v23, %v381_v20 }
  0xd9   :  { %v445_v29 = vsel %vm432_vm3, %v425_v26, %v401_v22  ;;  %v433_v30 = vsel %vm432_vm3, %v417_v31, %v425_v26  ;;  %v437_v50 = vsel %vm432_vm3, %v409_v18, %v417_v31  ;;  %v3864_v31 = vrot.slane %v2599_v7, %v3466_v43 }
  0xda   :  { %v472_v53 = vmul.f32 %v3779_v11, %v445_v29  ;;  %v474_v40 = vmul.f32 %v3788_v19, %v437_v50  ;;  %v475_v41 = vmul.f32 %v3797_v24, %v433_v30  ;;  %781 = vrot.lane.b32.xlu1 %v3391_v36, %s3203_s11  ;;  %2741 = vmatprep.subr.bf16.mxu0 %v2740_v27 }
  0xdb   :  { %773 = vrot.lane.b32.xlu0 %v3396_v37, %s3203_s11  ;;  %v522_v27 = vrot.slane %v2599_v7, %v3475_v45  ;;  %v3868_v50 = vrot.slane %v2599_v7, %v3479_v47 }
  0xdc   :  { %v405_v54 = vpop.permute.xlu1 %404  ;;  %v403_v51 = vpop.permute.xlu0 %402  ;;  %v2742_v44 = vpack.c.bf16 %v472_v53, %v380_v25  ;;  %v2820_v48 = vpack.c.bf16 %v475_v41, %v383_v28  ;;  %v2822_v49 = vpack.c.bf16 %v474_v40, %v382_v52  ;;  %v528_v40 = vmul.f32 %v3845_v15, %v3278_v3 }
  0xdd   :  { %v537_v7 = vmul.f32 %v3868_v50, %v3363_v32 }
  0xde   :  { %797 = vrot.lane.b32.xlu1 %v3405_v38, %s3203_s11  ;;  %2743 = vmatpush1.bf16.msra.mxu0 %v2742_v44  ;;  %v527_v44 = vmul.f32 %v3864_v31, %v3264_v1 }
  0xdf   :  { %789 = vrot.lane.b32.xlu0 %v3410_v39, %s3203_s11  ;;  %2821 = vmatprep.subr.bf16.mxu1 %v2820_v48  ;;  %v530_v48 = vmul.f32 %v522_v27, %v3273_v2 }
  0xe0   :  { %2823 = vmatpush1.bf16.msra.mxu1 %v2822_v49  ;;  %v413_v55 = vpop.permute.xlu1 %412  ;;  %v411_v56 = vpop.permute.xlu0 %410  ;;  %v529_v49 = vmul.f32 %v3868_v50, %v3259_v0 }
  0xe1   :  { %v443_v57 = vsel %vm432_vm3, %v405_v54, %v413_v55  ;;  %v442_v58 = vsel %vm432_vm3, %v403_v51, %v411_v56 }
  0xe2   :  { %v481_v59 = vmul.f32 %v3772_v10, %v443_v57  ;;  %v477_v60 = vmul.f32 %v3772_v10, %v442_v58  ;;  %879 = vrot.lane.b32.xlu1 %v3278_v3, %s3204_s1 }
  0xe3   :  { %871 = vrot.lane.b32.xlu0 %v3264_v1, %s3204_s1 }
  0xe4   :  { %v421_v61 = vpop.permute.xlu1 %420  ;;  %v419_v62 = vpop.permute.xlu0 %418  ;;  %v2744_v8 = vpack.c.bf16 %v481_v59, %v477_v60  ;;  %v531_v59 = vmul.f32 %v3864_v31, %v3292_v5  ;;  %v2600_v60 = vld [vmem:[%s4962_s4 + $0x5] ss:$8 sm:$0xf] }
  0xe5   :  { %v439_v63 = vsel %vm432_vm3, %v413_v55, %v421_v61  ;;  %v438_v6 = vsel %vm432_vm3, %v411_v56, %v419_v62  ;;  %v532_v55 = vmul.f32 %v3845_v15, %v3320_v14  ;;  %v534_v56 = vmul.f32 %v522_v27, %v3382_v35 }
  0xe6   :  { %895 = vrot.lane.b32.xlu1 %v3273_v2, %s3204_s1  ;;  %2745 = vmatprep.subr.bf16.mxu0 %v2744_v8  ;;  %v482_v9 = vmul.f32 %v3788_v19, %v439_v63  ;;  %v478_v12 = vmul.f32 %v3788_v19, %v438_v6  ;;  %v538_v2 = vmul.f32 %v522_v27, %v3377_v34 }
  0xe7   :  { %887 = vrot.lane.b32.xlu0 %v3259_v0, %s3204_s1  ;;  %v533_v6 = vmul.f32 %v3868_v50, %v3368_v33 }
  0xe8   :  { %v429_v18 = vpop.permute.xlu1 %428  ;;  %v427_v22 = vpop.permute.xlu0 %426 }
  0xe9   :  { %v435_v16 = vsel %vm432_vm3, %v421_v61, %v429_v18  ;;  %v447_v17 = vsel %vm432_vm3, %v429_v18, %v405_v54  ;;  %v434_v20 = vsel %vm432_vm3, %v419_v62, %v427_v22  ;;  %v446_v21 = vsel %vm432_vm3, %v427_v22, %v403_v51 }
  0xea   :  { %v480_v23 = vmul.f32 %v3779_v11, %v447_v17  ;;  %v483_v25 = vmul.f32 %v3797_v24, %v435_v16  ;;  %v476_v52 = vmul.f32 %v3779_v11, %v446_v21  ;;  %v479_v26 = vmul.f32 %v3797_v24, %v434_v20  ;;  %875 = vrot.lane.b32.xlu1 %v3287_v4, %s3204_s1 }
  0xeb   :  { %873 = vrot.lane.b32.xlu0 %v3292_v5, %s3204_s1  ;;  %v2826_v54 = vpack.c.bf16 %v482_v9, %v478_v12  ;;  %v535_v61 = vmul.f32 %v3864_v31, %v3287_v4  ;;  %v3916_v4 = vrot.slane %v2600_v60, %v3466_v43  ;;  %v2832_v12 = vpack.c.bf16 %v538_v2, %v534_v56 }
  0xec   :  { %v415_v28 = vpop.permute.xlu1 %414  ;;  %v2746_v29 = vpack.c.bf16 %v480_v23, %v476_v52  ;;  %v2824_v30 = vpack.c.bf16 %v483_v25, %v479_v26  ;;  %v3923_v22 = vrot.slane %v2600_v60, %v3475_v45  ;;  %v3931_v16 = vrot.slane %v2600_v60, %v3479_v47 }
  0xed   :  { %v407_v53 = vpop.permute.xlu0 %406  ;;  %v2834_v20 = vpack.c.bf16 %v537_v7, %v533_v6  ;;  %v542_v21 = vmul.f32 %v522_v27, %v3405_v38  ;;  %v539_v52 = vmul.f32 %v3864_v31, %v3396_v37  ;;  %v541_v26 = vmul.f32 %v3868_v50, %v3410_v39 }
  0xee   :  { %v444_v41 = vsel %vm432_vm3, %v407_v53, %v415_v28  ;;  %883 = vrot.lane.b32.xlu1 %v3315_v13, %s3204_s1  ;;  %2747 = vmatpush1.bf16.msra.mxu0 %v2746_v29 }
  0xef   :  { %v485_v51 = vmul.f32 %v3772_v10, %v444_v41  ;;  %881 = vrot.lane.b32.xlu0 %v3320_v14, %s3204_s1  ;;  %2825 = vmatprep.subr.bf16.mxu1 %v2824_v30  ;;  %v536_v10 = vmul.f32 %v3845_v15, %v3315_v13 }
  0xf0   :  { %2827 = vmatpush1.bf16.msra.mxu1 %v2826_v54  ;;  %v431_v3 = vpop.permute.xlu1 %430 }
  0xf1   :  { %v448_v57 = vsel %vm432_vm3, %v431_v3, %v407_v53  ;;  %v423_v58 = vpop.permute.xlu0 %422  ;;  %v2748_v1 = vpack.c.bf16 %v528_v40, %v485_v51  ;;  %v2752_v63 = vpack.c.bf16 %v536_v10, %v532_v55 }
  0xf2   :  { %v484_v0 = vmul.f32 %v3779_v11, %v448_v57  ;;  %v436_v14 = vsel %vm432_vm3, %v423_v58, %v431_v3  ;;  %v440_v13 = vsel %vm432_vm3, %v415_v28, %v423_v58  ;;  %891 = vrot.lane.b32.xlu1 %v3363_v32, %s3204_s1  ;;  %v3928_v32 = vrot.slane %v2600_v60, %v3477_v46 }
  0xf3   :  { %v486_v5 = vmul.f32 %v3788_v19, %v440_v13  ;;  %v487_v11 = vmul.f32 %v3797_v24, %v436_v14  ;;  %889 = vrot.lane.b32.xlu0 %v3368_v33, %s3204_s1  ;;  %2749 = vmatprep.subr.bf16.mxu0 %v2748_v1  ;;  %v2754_v33 = vpack.c.bf16 %v535_v61, %v531_v59 }
  0xf4   :  { %v568_v62 = vpop.permute.xlu1 %567  ;;  %v2750_v8 = vpack.c.bf16 %v527_v44, %v484_v0 }
  0xf5   :  { %v560_v19 = vpop.permute.xlu0 %559  ;;  %v2828_v24 = vpack.c.bf16 %v530_v48, %v487_v11  ;;  %v2830_v9 = vpack.c.bf16 %v529_v49, %v486_v5 }
  0xf6   :  { %v600_v18 = vsel %vm591_vm4, %v560_v19, %v568_v62  ;;  %899 = vrot.lane.b32.xlu1 %v3377_v34, %s3204_s1  ;;  %2751 = vmatpush1.bf16.msra.mxu0 %v2750_v8  ;;  %v540_v34 = vmul.f32 %v3845_v15, %v3391_v36 }
  0xf7   :  { %897 = vrot.lane.b32.xlu0 %v3382_v35, %s3204_s1  ;;  %2829 = vmatprep.subr.bf16.mxu1 %v2828_v24  ;;  %v631_v23 = vmul.f32 %v3916_v4, %v600_v18  ;;  %v2601_v24 = vld [vmem:[%s4962_s4 + $0x6] ss:$8 sm:$0xf] }
  0xf8   :  { %2831 = vmatpush1.bf16.msra.mxu1 %v2830_v9  ;;  %v584_v17 = vpop.permute.xlu1 %583  ;;  %2753 = vmatprep.subr.bf16.mxu0 %v2752_v63 }
  0xf9   :  { %v604_v35 = vsel %vm591_vm4, %v584_v17, %v560_v19  ;;  %v576_v25 = vpop.permute.xlu0 %575  ;;  %2833 = vmatprep.subr.bf16.mxu1 %v2832_v12  ;;  %v2758_v54 = vpack.c.bf16 %v631_v23, %v539_v52 }
  0xfa   :  { %v634_v28 = vmul.f32 %v3923_v22, %v604_v35  ;;  %v592_v15 = vsel %vm591_vm4, %v576_v25, %v584_v17  ;;  %v596_v27 = vsel %vm591_vm4, %v568_v62, %v576_v25  ;;  %885 = vrot.lane.b32.xlu1 %v3391_v36, %s3204_s1  ;;  %2755 = vmatpush1.bf16.msra.mxu0 %v2754_v33 }
  0xfb   :  { %v632_v29 = vmul.f32 %v3928_v32, %v596_v27  ;;  %v633_v30 = vmul.f32 %v3931_v16, %v592_v15  ;;  %877 = vrot.lane.b32.xlu0 %v3396_v37, %s3204_s1  ;;  %v3989_v33 = vrot.slane %v2601_v24, %v3466_v43  ;;  %v3992_v17 = vrot.slane %v2601_v24, %v3475_v45 }
  0xfc   :  { %2835 = vmatpush1.bf16.msra.mxu1 %v2834_v20  ;;  %v564_v31 = vpop.permute.xlu1 %563  ;;  %v2836_v50 = vpack.c.bf16 %v634_v28, %v542_v21  ;;  %v4000_v21 = vrot.slane %v2601_v24, %v3479_v47 }
  0xfd   :  { %v562_v53 = vpop.permute.xlu0 %561  ;;  %v2756_v40 = vpack.c.bf16 %v632_v29, %v540_v34  ;;  %v2838_v41 = vpack.c.bf16 %v633_v30, %v541_v26  ;;  %v3997_v34 = vrot.slane %v2601_v24, %v3477_v46 }
  0xfe   :  { %901 = vrot.lane.b32.xlu1 %v3405_v38, %s3204_s1  ;;  %2837 = vmatprep.subr.bf16.mxu1 %v2836_v50 }
  0xff   :  { %893 = vrot.lane.b32.xlu0 %v3410_v39, %s3204_s1  ;;  %2757 = vmatprep.subr.bf16.mxu0 %v2756_v40 }
 0x100   :  { %2759 = vmatpush1.bf16.msra.mxu0 %v2758_v54  ;;  %2839 = vmatpush1.bf16.msra.mxu1 %v2838_v41  ;;  %v572_v36 = vpop.permute.xlu1 %571 }
 0x101   :  { %v570_v51 = vpop.permute.xlu0 %569  ;;  %v602_v37 = vsel %vm591_vm4, %v564_v31, %v572_v36 }
 0x102   :  { %v601_v44 = vsel %vm591_vm4, %v562_v53, %v570_v51  ;;  %v639_v3 = vmul.f32 %v3916_v4, %v602_v37 }
 0x103   :  { %v635_v38 = vmul.f32 %v3916_v4, %v601_v44 }
 0x104   :  { %v580_v48 = vpop.permute.xlu1 %579 }
 0x105   :  { %v598_v49 = vsel %vm591_vm4, %v572_v36, %v580_v48  ;;  %v578_v39 = vpop.permute.xlu0 %577  ;;  %v2762_v0 = vpack.c.bf16 %v639_v3, %v635_v38 }
 0x106   :  { %v640_v55 = vmul.f32 %v3928_v32, %v598_v49  ;;  %v597_v10 = vsel %vm591_vm4, %v570_v51, %v578_v39 }
 0x107   :  { %v636_v56 = vmul.f32 %v3928_v32, %v597_v10 }
 0x108   :  { %v588_v57 = vpop.permute.xlu1 %587 }
 0x109   :  { %v594_v58 = vsel %vm591_vm4, %v580_v48, %v588_v57  ;;  %v606_v1 = vsel %vm591_vm4, %v588_v57, %v564_v31  ;;  %v586_v2 = vpop.permute.xlu0 %585  ;;  %v2760_v59 = vpack.c.bf16 %v640_v55, %v636_v56 }
 0x10a   :  { %v641_v14 = vmul.f32 %v3931_v16, %v594_v58  ;;  %v642_v13 = vmul.f32 %v3923_v22, %v606_v1  ;;  %v593_v60 = vsel %vm591_vm4, %v578_v39, %v586_v2  ;;  %v605_v61 = vsel %vm591_vm4, %v586_v2, %v562_v53 }
 0x10b   :  { %v637_v5 = vmul.f32 %v3931_v16, %v593_v60  ;;  %v638_v11 = vmul.f32 %v3923_v22, %v605_v61  ;;  %2761 = vmatprep.subr.bf16.mxu0 %v2760_v59 }
 0x10c   :  { %2763 = vmatpush1.bf16.msra.mxu0 %v2762_v0  ;;  %v574_v62 = vpop.permute.xlu1 %573 }
 0x10d   :  { %v566_v8 = vpop.permute.xlu0 %565  ;;  %v2840_v63 = vpack.c.bf16 %v642_v13, %v638_v11  ;;  %v2842_v6 = vpack.c.bf16 %v641_v14, %v637_v5 }
 0x10e   :  { %v603_v52 = vsel %vm591_vm4, %v566_v8, %v574_v62 }
 0x10f   :  { %2841 = vmatprep.subr.bf16.mxu1 %v2840_v63  ;;  %v643_v41 = vmul.f32 %v3916_v4, %v603_v52  ;;  %v981_v52 = vld [vmem:[%s4963_s2 + $0x30] sm:$0xff] }
 0x110   :  { %2843 = vmatpush1.bf16.msra.mxu1 %v2842_v6  ;;  %v590_v7 = vpop.permute.xlu1 %589  ;;  %v975_v6 = vld [vmem:[%s4963_s2] sm:$0xff] }
 0x111   :  { %v582_v19 = vpop.permute.xlu0 %581  ;;  %v607_v18 = vsel %vm591_vm4, %v590_v7, %v566_v8 }
 0x112   :  { %v595_v23 = vsel %vm591_vm4, %v582_v19, %v590_v7  ;;  %v599_v35 = vsel %vm591_vm4, %v574_v62, %v582_v19  ;;  %v646_v26 = vmul.f32 %v3923_v22, %v607_v18  ;;  %v978_v18 = vld [vmem:[%s4963_s2 + $0x18] sm:$0xff] }
 0x113   :  { %v644_v50 = vmul.f32 %v3928_v32, %v599_v35  ;;  %v645_v53 = vmul.f32 %v3931_v16, %v595_v23  ;;  %v982_v23 = vld [vmem:[%s4963_s2 + $0x38] sm:$0xff] }
 0x114   :  { %v672_v9 = vpop.permute.xlu1 %671  ;;  %v2602_v35 = vld [vmem:[%s4962_s4 + $0x7] ss:$8 sm:$0xf] }
 0x115   :  { %v664_v12 = vpop.permute.xlu0 %663 }
 0x116   :  { %v704_v20 = vsel %vm695_vm5, %v664_v12, %v672_v9 }
 0x117   :  { %v735_v27 = vmul.f32 %v3989_v33, %v704_v20 }
 0x118   :  { %v688_v25 = vpop.permute.xlu1 %687 }
 0x119   :  { %v708_v28 = vsel %vm695_vm5, %v688_v25, %v664_v12  ;;  %v680_v15 = vpop.permute.xlu0 %679  ;;  %v2766_v48 = vpack.c.bf16 %v735_v27, %v643_v41  ;;  %v984_v41 = vld [vmem:[%s4963_s2 + $0x48] sm:$0xff] }
 0x11a   :  { %v738_v29 = vmul.f32 %v3992_v17, %v708_v28  ;;  %v696_v30 = vsel %vm695_vm5, %v680_v15, %v688_v25  ;;  %v700_v31 = vsel %vm695_vm5, %v672_v9, %v680_v15  ;;  %v979_v9 = vld [vmem:[%s4963_s2 + $0x20] sm:$0xff]  ;;  %v985_v28 = vld [vmem:[%s4963_s2 + $0x50] sm:$0xff] }
 0x11b   :  { %v736_v22 = vmul.f32 %v3997_v34, %v700_v31  ;;  %v737_v40 = vmul.f32 %v4000_v21, %v696_v30  ;;  %v4076_v30 = vrot.slane %v2602_v35, %v3475_v45 }
 0x11c   :  { %v668_v54 = vpop.permute.xlu1 %667  ;;  %v2844_v36 = vpack.c.bf16 %v738_v29, %v646_v26  ;;  %v4073_v29 = vrot.slane %v2602_v35, %v3466_v43 }
 0x11d   :  { %v666_v51 = vpop.permute.xlu0 %665  ;;  %v2764_v37 = vpack.c.bf16 %v736_v22, %v644_v50  ;;  %v2846_v44 = vpack.c.bf16 %v737_v40, %v645_v53  ;;  %v4081_v50 = vrot.slane %v2602_v35, %v3477_v46  ;;  %v4084_v53 = vrot.slane %v2602_v35, %v3479_v47 }
 0x11e   :  { %2845 = vmatprep.subr.bf16.mxu1 %v2844_v36 }
 0x11f   :  { %2765 = vmatprep.subr.bf16.mxu0 %v2764_v37  ;;  %2847 = vmatpush1.bf16.msra.mxu1 %v2846_v44 }
 0x120   :  { %2767 = vmatpush1.bf16.msra.mxu0 %v2766_v48  ;;  %v676_v3 = vpop.permute.xlu1 %675  ;;  %v988_v48 = vld [vmem:[%s4963_s2 + $0x68] sm:$0xff] }
 0x121   :  { %v674_v32 = vpop.permute.xlu0 %673  ;;  %v706_v16 = vsel %vm695_vm5, %v668_v54, %v676_v3 }
 0x122   :  { %v705_v38 = vsel %vm695_vm5, %v666_v51, %v674_v32  ;;  %v743_v4 = vmul.f32 %v3989_v33, %v706_v16 }
 0x123   :  { %v739_v39 = vmul.f32 %v3989_v33, %v705_v38 }
 0x124   :  { %v684_v49 = vpop.permute.xlu1 %683 }
 0x125   :  { %v702_v55 = vsel %vm695_vm5, %v676_v3, %v684_v49  ;;  %v682_v10 = vpop.permute.xlu0 %681  ;;  %v2770_v13 = vpack.c.bf16 %v743_v4, %v739_v39 }
 0x126   :  { %v744_v56 = vmul.f32 %v3997_v34, %v702_v55  ;;  %v701_v57 = vsel %vm695_vm5, %v674_v32, %v682_v10 }
 0x127   :  { %v740_v58 = vmul.f32 %v3997_v34, %v701_v57 }
 0x128   :  { %v692_v1 = vpop.permute.xlu1 %691 }
 0x129   :  { %v698_v2 = vsel %vm695_vm5, %v684_v49, %v692_v1  ;;  %v710_v59 = vsel %vm695_vm5, %v692_v1, %v668_v54  ;;  %v690_v0 = vpop.permute.xlu0 %689  ;;  %v2768_v14 = vpack.c.bf16 %v744_v56, %v740_v58  ;;  %v991_v1 = vld [vmem:[%s4963_s2 + $0x80] sm:$0xff] }
 0x12a   :  { %v745_v60 = vmul.f32 %v4000_v21, %v698_v2  ;;  %v746_v61 = vmul.f32 %v3992_v17, %v710_v59  ;;  %v697_v5 = vsel %vm695_vm5, %v682_v10, %v690_v0  ;;  %v709_v11 = vsel %vm695_vm5, %v690_v0, %v666_v51 }
 0x12b   :  { %v741_v62 = vmul.f32 %v4000_v21, %v697_v5  ;;  %v742_v8 = vmul.f32 %v3992_v17, %v709_v11  ;;  %2769 = vmatprep.subr.bf16.mxu0 %v2768_v14  ;;  %v990_v14 = vld [vmem:[%s4963_s2 + $0x78] sm:$0xff] }
 0x12c   :  { %2771 = vmatpush1.bf16.msra.mxu0 %v2770_v13  ;;  %v678_v63 = vpop.permute.xlu1 %677  ;;  %v994_v13 = vld [vmem:[%s4963_s2 + $0x98] sm:$0xff] }
 0x12d   :  { %v670_v7 = vpop.permute.xlu0 %669  ;;  %v2848_v19 = vpack.c.bf16 %v746_v61, %v742_v8  ;;  %v2850_v24 = vpack.c.bf16 %v745_v60, %v741_v62 }
 0x12e   :  { %v707_v54 = vsel %vm695_vm5, %v670_v7, %v678_v63 }
 0x12f   :  { %2849 = vmatprep.subr.bf16.mxu1 %v2848_v19  ;;  %1301 = vmatmul.mubr.f32.vlgmr.msra.gmra.mrb[0].mxu0 %v975_v6  ;;  %v747_v4 = vmul.f32 %v3989_v33, %v707_v54  ;;  %v997_v19 = vld [vmem:[%s4963_s2 + $0xb0] sm:$0xff] }
 0x130   :  { %2851 = vmatpush1.bf16.msra.mxu1 %v2850_v24  ;;  %v694_v12 = vpop.permute.xlu1 %693  ;;  %1306 = vmatprep.mubr.f32.mxu0 %v979_v9 }
 0x131   :  { %v686_v20 = vpop.permute.xlu0 %685  ;;  %v711_v15 = vsel %vm695_vm5, %v694_v12, %v670_v7 }
 0x132   :  { %v703_v27 = vsel %vm695_vm5, %v678_v63, %v686_v20  ;;  %v699_v22 = vsel %vm695_vm5, %v686_v20, %v694_v12  ;;  %v750_v36 = vmul.f32 %v3992_v17, %v711_v15 }
 0x133   :  { %1623 = vmatmul.mubr.f32.vlgmr.msra.gmra.mrb[0].mxu1 %v975_v6  ;;  %1307 = vmatmul.mubr.f32.gmra.mrb[2].mxu0 %v978_v18  ;;  %v748_v51 = vmul.f32 %v3997_v34, %v703_v27  ;;  %v749_v34 = vmul.f32 %v4000_v21, %v699_v22  ;;  %v987_v21 = vld [vmem:[%s4963_s2 + $0x60] sm:$0xff]  ;;  %v993_v6 = vld [vmem:[%s4963_s2 + $0x90] sm:$0xff] }
 0x134   :  { %v776_v25 = vpop.permute.xlu1 %775  ;;  %1628 = vmatprep.mubr.f32.mxu1 %v979_v9  ;;  %1312 = vmatprep.mubr.f32.mxu0 %v982_v23 }
 0x135   :  { %v768_v26 = vpop.permute.xlu0 %767 }
 0x136   :  { %v808_v31 = vsel %vm799_vm6, %v768_v26, %v776_v25 }
 0x137   :  { %1629 = vmatmul.mubr.f32.gmra.mrb[2].mxu1 %v978_v18  ;;  %1313 = vmatmul.mubr.f32.gmra.mrb[4].mxu0 %v981_v52  ;;  %v839_v3 = vmul.f32 %v4073_v29, %v808_v31  ;;  %v1000_v31 = vld [vmem:[%s4963_s2 + $0xc8] sm:$0xff] }
 0x138   :  { %v792_v40 = vpop.permute.xlu1 %791  ;;  %1634 = vmatprep.mubr.f32.mxu1 %v982_v23  ;;  %1318 = vmatprep.mubr.f32.mxu0 %v985_v28 }
 0x139   :  { %v812_v37 = vsel %vm799_vm6, %v792_v40, %v768_v26  ;;  %v784_v44 = vpop.permute.xlu0 %783  ;;  %v2774_v58 = vpack.c.bf16 %v839_v3, %v747_v4  ;;  %v1002_v3 = vld [vmem:[%s4963_s2 + $0xd8] sm:$0xff] }
 0x13a   :  { %v842_v32 = vmul.f32 %v4076_v30, %v812_v37  ;;  %v800_v16 = vsel %vm799_vm6, %v784_v44, %v792_v40  ;;  %v804_v17 = vsel %vm799_vm6, %v776_v25, %v784_v44 }
 0x13b   :  { %v840_v38 = vmul.f32 %v4081_v50, %v804_v17  ;;  %v841_v49 = vmul.f32 %v4084_v53, %v800_v16  ;;  %1635 = vmatmul.mubr.f32.gmra.mrb[4].mxu1 %v981_v52  ;;  %1319 = vmatmul.mubr.f32.gmra.mrb[6].mxu0 %v984_v41 }
 0x13c   :  { %v772_v39 = vpop.permute.xlu1 %771  ;;  %v2852_v55 = vpack.c.bf16 %v842_v32, %v750_v36  ;;  %1640 = vmatprep.mubr.f32.mxu1 %v985_v28  ;;  %1324 = vmatprep.mubr.f32.mxu0 %v988_v48  ;;  %v996_v28 = vld [vmem:[%s4963_s2 + $0xa8] sm:$0xff]  ;;  %v999_v36 = vld [vmem:[%s4963_s2 + $0xc0] sm:$0xff]  ;;  %v1006_v32 = vld [vmem:[%s4963_s2 + $0xf8] sm:$0xff] }
 0x13d   :  { %v2854_v10 = vpack.c.bf16 %v841_v49, %v749_v34  ;;  %v770_v56 = vpop.permute.xlu0 %769  ;;  %v2772_v57 = vpack.c.bf16 %v840_v38, %v748_v51  ;;  %v1003_v51 = vld [vmem:[%s4963_s2 + $0xe0] sm:$0xff] }
 0x13e   :  { %2853 = vmatprep.subr.bf16.mxu1 %v2852_v55 }
 0x13f   :  { %2773 = vmatprep.subr.bf16.mxu0 %v2772_v57  ;;  %2855 = vmatpush1.bf16.msra.mxu1 %v2854_v10  ;;  %v1009_v10 = vld [vmem:[%s4963_s2 + $0x110] sm:$0xff] }
 0x140   :  { %2775 = vmatpush1.bf16.msra.mxu0 %v2774_v58  ;;  %v780_v33 = vpop.permute.xlu1 %779  ;;  %1641 = vmatmul.mubr.f32.gmra.mrb[6].mxu1 %v984_v41 }
 0x141   :  { %v810_v2 = vsel %vm799_vm6, %v772_v39, %v780_v33  ;;  %v778_v59 = vpop.permute.xlu0 %777  ;;  %1646 = vmatprep.mubr.f32.mxu1 %v988_v48  ;;  %1325 = vmatmul.mubr.f32.gmra.mrb[8].mxu0 %v987_v21  ;;  %v2603_v48 = vld [vmem:[%s4962_s4 + $0x20] ss:$8 sm:$0xf] }
 0x142   :  { %v809_v0 = vsel %vm799_vm6, %v770_v56, %v778_v59  ;;  %1330 = vmatprep.mubr.f32.mxu0 %v991_v1  ;;  %v847_v60 = vmul.f32 %v4073_v29, %v810_v2  ;;  %v4175_v17 = vrot.slane %v2603_v48, %v3466_v43  ;;  %v4182_v4 = vrot.slane %v2603_v48, %v3475_v45 }
 0x143   :  { %v843_v61 = vmul.f32 %v4073_v29, %v809_v0  ;;  %v4188_v43 = vrot.slane %v2603_v48, %v3477_v46  ;;  %v4191_v55 = vrot.slane %v2603_v48, %v3479_v47 }
 0x144   :  { %v788_v5 = vpop.permute.xlu1 %787  ;;  %1647 = vmatmul.mubr.f32.gmra.mrb[8].mxu1 %v987_v21 }
 0x145   :  { %v806_v11 = vsel %vm799_vm6, %v780_v33, %v788_v5  ;;  %v786_v62 = vpop.permute.xlu0 %785  ;;  %1652 = vmatprep.mubr.f32.mxu1 %v991_v1  ;;  %1331 = vmatmul.mubr.f32.gmra.mrb[10].mxu0 %v990_v14  ;;  %v2778_v24 = vpack.c.bf16 %v847_v60, %v843_v61 }
 0x146   :  { %v848_v8 = vmul.f32 %v4081_v50, %v806_v11  ;;  %v805_v63 = vsel %vm799_vm6, %v778_v59, %v786_v62  ;;  %1336 = vmatprep.mubr.f32.mxu0 %v994_v13 }
 0x147   :  { %v844_v7 = vmul.f32 %v4081_v50, %v805_v63 }
 0x148   :  { %v796_v9 = vpop.permute.xlu1 %795  ;;  %1653 = vmatmul.mubr.f32.gmra.mrb[10].mxu1 %v990_v14 }
 0x149   :  { %v802_v12 = vsel %vm799_vm6, %v788_v5, %v796_v9  ;;  %v814_v18 = vsel %vm799_vm6, %v796_v9, %v772_v39  ;;  %v794_v20 = vpop.permute.xlu0 %793  ;;  %v2776_v23 = vpack.c.bf16 %v848_v8, %v844_v7  ;;  %1658 = vmatprep.mubr.f32.mxu1 %v994_v13  ;;  %1337 = vmatmul.mubr.f32.gmra.mrb[12].mxu0 %v993_v6  ;;  %v1005_v39 = vld [vmem:[%s4963_s2 + $0xf0] sm:$0xff] }
 0x14a   :  { %v849_v35 = vmul.f32 %v4084_v53, %v802_v12  ;;  %v850_v25 = vmul.f32 %v4076_v30, %v814_v18  ;;  %v801_v52 = vsel %vm799_vm6, %v786_v62, %v794_v20  ;;  %v813_v26 = vsel %vm799_vm6, %v794_v20, %v770_v56  ;;  %1342 = vmatprep.mubr.f32.mxu0 %v997_v19  ;;  %v1014_v12 = vld [vmem:[%s4963_s2 + $0x138] sm:$0xff] }
 0x14b   :  { %v845_v15 = vmul.f32 %v4084_v53, %v801_v52  ;;  %v846_v27 = vmul.f32 %v4076_v30, %v813_v26  ;;  %2777 = vmatprep.subr.bf16.mxu0 %v2776_v23  ;;  %v1018_v18 = vld [vmem:[%s4963_s2 + $0x158] sm:$0xff] }
 0x14c   :  { %2779 = vmatpush1.bf16.msra.mxu0 %v2778_v24  ;;  %v782_v22 = vpop.permute.xlu1 %781  ;;  %1659 = vmatmul.mubr.f32.gmra.mrb[12].mxu1 %v993_v6  ;;  %v1012_v6 = vld [vmem:[%s4963_s2 + $0x128] sm:$0xff] }
 0x14d   :  { %v2858_v40 = vpack.c.bf16 %v849_v35, %v845_v15  ;;  %v774_v41 = vpop.permute.xlu0 %773  ;;  %v2856_v54 = vpack.c.bf16 %v850_v25, %v846_v27  ;;  %1664 = vmatprep.mubr.f32.mxu1 %v997_v19  ;;  %1343 = vmatmul.mubr.f32.gmra.mrb[14].mxu0 %v996_v28  ;;  %v1017_v15 = vld [vmem:[%s4963_s2 + $0x150] sm:$0xff] }
 0x14e   :  { %1348 = vmatprep.mubr.f32.mxu0 %v1000_v31  ;;  %v811_v45 = vsel %vm799_vm6, %v774_v41, %v782_v22 }
 0x14f   :  { %2857 = vmatprep.subr.bf16.mxu1 %v2856_v54  ;;  %v851_v61 = vmul.f32 %v4073_v29, %v811_v45  ;;  %v1015_v29 = vld [vmem:[%s4963_s2 + $0x140] sm:$0xff]  ;;  %v3205_v45 = vmov 0.0  }
 0x150   :  { %2859 = vmatpush1.bf16.msra.mxu1 %v2858_v40  ;;  %v798_v37 = vpop.permute.xlu1 %797  ;;  %v1021_v40 = vld [vmem:[%s4963_s2 + $0x170] sm:$0xff] }
 0x151   :  { %v790_v44 = vpop.permute.xlu0 %789  ;;  %1665 = vmatmul.mubr.f32.gmra.mrb[14].mxu1 %v996_v28  ;;  %1349 = vmatmul.mubr.f32.gmra.mrb[16].mxu0 %v999_v36  ;;  %v815_v38 = vsel %vm799_vm6, %v798_v37, %v774_v41 }
 0x152   :  { %1670 = vmatprep.mubr.f32.mxu1 %v1000_v31  ;;  %1354 = vmatprep.mubr.f32.mxu0 %v1003_v51  ;;  %v803_v56 = vsel %vm799_vm6, %v790_v44, %v798_v37  ;;  %v807_v57 = vsel %vm799_vm6, %v782_v22, %v790_v44  ;;  %v854_v46 = vmul.f32 %v4076_v30, %v815_v38  ;;  %v1008_v30 = vld [vmem:[%s4963_s2 + $0x108] sm:$0xff] }
 0x153   :  { %v852_v0 = vmul.f32 %v4081_v50, %v807_v57  ;;  %v853_v14 = vmul.f32 %v4084_v53, %v803_v56  ;;  %v1011_v53 = vld [vmem:[%s4963_s2 + $0x120] sm:$0xff] }
 0x154   :  { %v880_v16 = vpop.permute.xlu1 %879 }
 0x155   :  { %v872_v34 = vpop.permute.xlu0 %871  ;;  %1671 = vmatmul.mubr.f32.gmra.mrb[16].mxu1 %v999_v36  ;;  %1355 = vmatmul.mubr.f32.gmra.mrb[18].mxu0 %v1002_v3 }
 0x156   :  { %v912_v49 = vsel %vm903_vm7, %v872_v34, %v880_v16  ;;  %1676 = vmatprep.mubr.f32.mxu1 %v1003_v51  ;;  %1360 = vmatprep.mubr.f32.mxu0 %v1006_v32 }
 0x157   :  { %v943_v21 = vmul.f32 %v4175_v17, %v912_v49 }
 0x158   :  { %v896_v58 = vpop.permute.xlu1 %895 }
 0x159   :  { %v916_v47 = vsel %vm903_vm7, %v896_v58, %v872_v34  ;;  %v888_v1 = vpop.permute.xlu0 %887  ;;  %1677 = vmatmul.mubr.f32.gmra.mrb[18].mxu1 %v1002_v3  ;;  %1361 = vmatmul.mubr.f32.gmra.mrb[20].mxu0 %v1005_v39  ;;  %v2782_v50 = vpack.c.bf16 %v943_v21, %v851_v61  ;;  %v1007_v61 = vld [vmem:[%s4963_s2 + $0x100] sm:$0xff] }
 0x15a   :  { %v946_v33 = vmul.f32 %v4182_v4, %v916_v47  ;;  %v904_v2 = vsel %vm903_vm7, %v888_v1, %v896_v58  ;;  %v908_v59 = vsel %vm903_vm7, %v880_v16, %v888_v1  ;;  %1682 = vmatprep.mubr.f32.mxu1 %v1006_v32  ;;  %1366 = vmatprep.mubr.f32.mxu0 %v1009_v10  ;;  %v1020_v32 = vld [vmem:[%s4963_s2 + $0x168] sm:$0xff] }
 0x15b   :  { %v944_v13 = vmul.f32 %v4188_v43, %v908_v59  ;;  %v945_v60 = vmul.f32 %v4191_v55, %v904_v2  ;;  %v977_v59 = vld [vmem:[%s4963_s2 + $0x10] sm:$0xff] }
 0x15c   :  { %v876_v5 = vpop.permute.xlu1 %875  ;;  %v2860_v11 = vpack.c.bf16 %v946_v33, %v854_v46 }
 0x15d   :  { %v2862_v62 = vpack.c.bf16 %v945_v60, %v853_v14  ;;  %v874_v8 = vpop.permute.xlu0 %873  ;;  %v2780_v63 = vpack.c.bf16 %v944_v13, %v852_v0  ;;  %1683 = vmatmul.mubr.f32.gmra.mrb[20].mxu1 %v1005_v39  ;;  %1367 = vmatmul.mubr.f32.gmra.mrb[22].mxu0 %v1008_v30  ;;  %v995_v0 = vld [vmem:[%s4963_s2 + $0xa0] sm:$0xff]  ;;  %v998_v14 = vld [vmem:[%s4963_s2 + $0xb8] sm:$0xff]  ;;  %v1001_v13 = vld [vmem:[%s4963_s2 + $0xd0] sm:$0xff] }
 0x15e   :  { %2861 = vmatprep.subr.bf16.mxu1 %v2860_v11  ;;  %1688 = vmatprep.mubr.f32.mxu1 %v1009_v10  ;;  %v1004_v60 = vld [vmem:[%s4963_s2 + $0xe8] sm:$0xff]  ;;  %v1013_v11 = vld [vmem:[%s4963_s2 + $0x130] sm:$0xff] }
 0x15f   :  { %2781 = vmatprep.subr.bf16.mxu0 %v2780_v63  ;;  %2863 = vmatpush1.bf16.msra.mxu1 %v2862_v62  ;;  %v1016_v62 = vld [vmem:[%s4963_s2 + $0x148] sm:$0xff]  ;;  %v1022_v63 = vld [vmem:[%s4963_s2 + $0x178] sm:$0xff] }
 0x160   :  { %2783 = vmatpush1.bf16.msra.mxu0 %v2782_v50  ;;  %v884_v7 = vpop.permute.xlu1 %883  ;;  %1372 = vmatprep.mubr.f32.mxu0 %v1012_v6  ;;  %v4397_v50 = vld [vmem:[%s4964_s3 + $0x10] sm:$0xff] }
 0x161   :  { %v914_v19 = vsel %vm903_vm7, %v876_v5, %v884_v7  ;;  %v882_v24 = vpop.permute.xlu0 %881  ;;  %1689 = vmatmul.mubr.f32.gmra.mrb[22].mxu1 %v1008_v30  ;;  %1373 = vmatmul.mubr.f32.gmra.mrb[24].mxu0 %v1011_v53 }
 0x162   :  { %v913_v9 = vsel %vm903_vm7, %v874_v8, %v882_v24  ;;  %1694 = vmatprep.mubr.f32.mxu1 %v1012_v6  ;;  %1378 = vmatprep.mubr.f32.mxu0 %v1015_v29  ;;  %v951_v20 = vmul.f32 %v4175_v17, %v914_v19  ;;  %v1984_v6 = vld [vmem:[%s4965_s5] sm:$0xff]  ;;  %v4415_v19 = vld [vmem:[%s4964_s3 + $0x8] sm:$0xff] }
 0x163   :  { %v947_v23 = vmul.f32 %v4175_v17, %v913_v9 }
 0x164   :  { %v892_v35 = vpop.permute.xlu1 %891 }
 0x165   :  { %v910_v25 = vsel %vm903_vm7, %v884_v7, %v892_v35  ;;  %v890_v52 = vpop.permute.xlu0 %889  ;;  %1695 = vmatmul.mubr.f32.gmra.mrb[24].mxu1 %v1011_v53  ;;  %1379 = vmatmul.mubr.f32.gmra.mrb[26].mxu0 %v1014_v12  ;;  %v2786_v31 = vpack.c.bf16 %v951_v20, %v947_v23  ;;  %v4402_v53 = vld [vmem:[%s4964_s3] sm:$0xff]  ;;  %v4410_v7 = vld [vmem:[%s4964_s3 + $0x18] sm:$0xff]  ;;  %v4426_v20 = vld [vmem:[%s4964_s3 + $0x30] sm:$0xff] }
 0x166   :  { %v952_v26 = vmul.f32 %v4188_v43, %v910_v25  ;;  %v909_v28 = vsel %vm903_vm7, %v882_v24, %v890_v52  ;;  %1700 = vmatprep.mubr.f32.mxu1 %v1015_v29  ;;  %1384 = vmatprep.mubr.f32.mxu0 %v1018_v18  ;;  %v1985_v29 = vld [vmem:[%s4965_s5 + $0x8] sm:$0xff]  ;;  %v2314_v24 = vmul.f32 %v4397_v50, %v1984_v6  ;;  %v1987_v25 = vld [vmem:[%s4965_s5 + $0x18] sm:$0xff] }
 0x167   :  { %v948_v27 = vmul.f32 %v4188_v43, %v909_v28  ;;  %v1992_v9 = vmul.f32 %v1984_v6, %v4402_v53  ;;  %v1993_v23 = vmul.f32 %v1985_v29, %v4415_v19  ;;  %v4445_v28 = vld [vmem:[%s4964_s3 + $0x28] sm:$0xff] }
 0x168   :  { %v900_v22 = vpop.permute.xlu1 %899 }
 0x169   :  { %v906_v41 = vsel %vm903_vm7, %v892_v35, %v900_v22  ;;  %v918_v54 = vsel %vm903_vm7, %v900_v22, %v876_v5  ;;  %v898_v36 = vpop.permute.xlu0 %897  ;;  %v2784_v51 = vpack.c.bf16 %v952_v26, %v948_v27  ;;  %1701 = vmatmul.mubr.f32.gmra.mrb[26].mxu1 %v1014_v12  ;;  %1385 = vmatmul.mubr.f32.gmra.mrb[28].mxu0 %v1017_v15  ;;  %v1010_v5 = vld [vmem:[%s4963_s2 + $0x118] sm:$0xff]  ;;  %v4432_v35 = vld [vmem:[%s4964_s3 + $0x20] sm:$0xff] }
 0x16a   :  { %v953_v37 = vmul.f32 %v4191_v55, %v906_v41  ;;  %v954_v44 = vmul.f32 %v4182_v4, %v918_v54  ;;  %v905_v48 = vsel %vm903_vm7, %v890_v52, %v898_v36  ;;  %v917_v3 = vsel %vm903_vm7, %v898_v36, %v874_v8  ;;  %1706 = vmatprep.mubr.f32.mxu1 %v1018_v18  ;;  %v1019_v8 = vld [vmem:[%s4963_s2 + $0x160] sm:$0xff]  ;;  %v1986_v18 = vld [vmem:[%s4965_s5 + $0x10] sm:$0xff]  ;;  %v4440_v52 = vld [vmem:[%s4964_s3 + $0x38] sm:$0xff] }
 0x16b   :  { %v949_v16 = vmul.f32 %v4191_v55, %v905_v48  ;;  %v950_v34 = vmul.f32 %v4182_v4, %v917_v3  ;;  %2785 = vmatprep.subr.bf16.mxu0 %v2784_v51  ;;  %1390 = vmatprep.mubr.f32.mxu0 %v1021_v40  ;;  %v2315_v12 = vmul.f32 %v4410_v7, %v1985_v29  ;;  %v1988_v41 = vld [vmem:[%s4965_s5 + $0x20] sm:$0xff]  ;;  %v4461_v48 = vld [vmem:[%s4964_s3 + $0x50] sm:$0xff] }
 0x16c   :  { %2787 = vmatpush1.bf16.msra.mxu0 %v2786_v31  ;;  %v886_v38 = vpop.permute.xlu1 %885  ;;  %v2316_v22 = vmul.f32 %v4426_v20, %v1986_v18 }
 0x16d   :  { %v2866_v49 = vpack.c.bf16 %v953_v37, %v949_v16  ;;  %v878_v39 = vpop.permute.xlu0 %877  ;;  %1707 = vmatmul.mubr.f32.gmra.mrb[28].mxu1 %v1017_v15  ;;  %v2864_v10 = vpack.c.bf16 %v954_v44, %v950_v34  ;;  %1391 = vmatmul.mubr.f32.gmra.mrb[30].mxu0 %v1020_v32  ;;  %v1994_v37 = vmul.f32 %v1986_v18, %v4432_v35  ;;  %v1989_v34 = vld [vmem:[%s4965_s5 + $0x28] sm:$0xff] }
 0x16e   :  { %1712 = vmatprep.mubr.f32.mxu1 %v1021_v40  ;;  %1461 = vmatprep.mubr.f32.mxu0 %v3205_v45  ;;  %v915_v57 = vsel %vm903_vm7, %v878_v39, %v886_v38  ;;  %v4451_v40 = vld [vmem:[%s4964_s3 + $0x40] sm:$0xff]  ;;  %v2317_v44 = vmul.f32 %v4440_v52, %v1987_v25  ;;  %v1995_v16 = vmul.f32 %v1987_v25, %v4445_v28 }
 0x16f   :  { %2865 = vmatprep.subr.bf16.mxu1 %v2864_v10  ;;  %v955_v30 = vmul.f32 %v4175_v17, %v915_v57  ;;  %v983_v17 = vld [vmem:[%s4963_s2 + $0x40] sm:$0xff] }
 0x170   :  { %2867 = vmatpush1.bf16.msra.mxu1 %v2866_v49  ;;  %v902_v56 = vpop.permute.xlu1 %901 }
 0x171   :  { %v919_v58 = vsel %vm903_vm7, %v902_v56, %v878_v39  ;;  %v894_v46 = vpop.permute.xlu0 %893  ;;  %1713 = vmatmul.mubr.f32.gmra.mrb[30].mxu1 %v1020_v32 }
 0x172   :  { %v958_v21 = vmul.f32 %v4182_v4, %v919_v58  ;;  %v907_v47 = vsel %vm903_vm7, %v894_v46, %v902_v56  ;;  %v911_v1 = vsel %vm903_vm7, %v886_v38, %v894_v46  ;;  %1783 = vmatprep.mubr.f32.mxu1 %v3205_v45  ;;  %v986_v4 = vld [vmem:[%s4963_s2 + $0x58] sm:$0xff]  ;;  %v4476_v56 = vld [vmem:[%s4964_s3 + $0x48] sm:$0xff] }
 0x173   :  { %v956_v33 = vmul.f32 %v4188_v43, %v911_v1  ;;  %v957_v2 = vmul.f32 %v4191_v55, %v907_v47  ;;  %v989_v43 = vld [vmem:[%s4963_s2 + $0x70] sm:$0xff]  ;;  %v992_v55 = vld [vmem:[%s4963_s2 + $0x88] sm:$0xff]  ;;  %v4470_v38 = vld [vmem:[%s4964_s3 + $0x58] sm:$0xff]  ;;  %4977 = vst [vmem:[#allocation5_spill] sm:$0xff] %v4476_v56  ;;  %v2318_v47 = vmul.f32 %v4461_v48, %v1988_v41 }
 0x174   :  { %1735 = vmatprep.subr.mxu1 %v958_v21  ;;  %4976 = vst [vmem:[#allocation4_spill] sm:$0xff] %v4470_v38 }
 0x175   :  { %1413 = vmatprep.subr.mxu0 %v956_v33  ;;  %1736 = vmatpush1.msra.mxu1 %v957_v2 }
 0x176   :  { %1414 = vmatpush1.msra.mxu0 %v955_v30  ;;  %2620 = vmatmul.mubr.msk.f32.vlgmr.msra.gmra.mrb[0].mxu1 %vm1187_vm8, %v977_v59  ;;  %v1990_v30 = vld [vmem:[%s4965_s5 + $0x30] sm:$0xff] }
 0x177   :  { %2604 = vmatmul.mubr.msk.f32.vlgmr.msra.gmra.mrb[0].mxu0 %vm1187_vm8, %v977_v59  ;;  %1789 = vmatprep.mubr.f32.mxu1 %v3205_v45  ;;  %v2319_v59 = vmul.f32 %v4470_v38, %v1989_v34 }
 0x178   :  { %1467 = vmatprep.mubr.f32.mxu0 %v3205_v45 }
 0x17a   :  { %2621 = vmatmul.mubr.msk.f32.gmra.mrb[2].mxu1 %vm1187_vm8, %v980_v42 }
 0x17b   :  { %2605 = vmatmul.mubr.msk.f32.gmra.mrb[2].mxu0 %vm1187_vm8, %v980_v42  ;;  %1795 = vmatprep.mubr.f32.mxu1 %v3205_v45  ;;  %v4486_v42 = vld [vmem:[%s4964_s3 + $0x70] sm:$0xff] }
 0x17c   :  { %1473 = vmatprep.mubr.f32.mxu0 %v3205_v45  ;;  %4978 = vst [vmem:[#allocation6_spill] sm:$0xff] %v4486_v42 }
 0x17e   :  { %2622 = vmatmul.mubr.msk.f32.gmra.mrb[4].mxu1 %vm1187_vm8, %v983_v17 }
 0x17f   :  { %2606 = vmatmul.mubr.msk.f32.gmra.mrb[4].mxu0 %vm1187_vm8, %v983_v17  ;;  %1801 = vmatprep.mubr.f32.mxu1 %v3205_v45 }
 0x180   :  { %1479 = vmatprep.mubr.f32.mxu0 %v3205_v45 }
 0x182   :  { %2623 = vmatmul.mubr.msk.f32.gmra.mrb[6].mxu1 %vm1187_vm8, %v986_v4 }
 0x183   :  { %2607 = vmatmul.mubr.msk.f32.gmra.mrb[6].mxu0 %vm1187_vm8, %v986_v4  ;;  %1807 = vmatprep.mubr.f32.mxu1 %v3205_v45 }
 0x184   :  { %1485 = vmatprep.mubr.f32.mxu0 %v3205_v45 }
 0x186   :  { %2624 = vmatmul.mubr.msk.f32.gmra.mrb[8].mxu1 %vm1187_vm8, %v989_v43 }
 0x187   :  { %2608 = vmatmul.mubr.msk.f32.gmra.mrb[8].mxu0 %vm1187_vm8, %v989_v43  ;;  %1813 = vmatprep.mubr.f32.mxu1 %v3205_v45  ;;  %v1997_v43 = vmul.f32 %v1989_v34, %v4476_v56 }
 0x188   :  { %1491 = vmatprep.mubr.f32.mxu0 %v3205_v45 }
 0x18a   :  { %2625 = vmatmul.mubr.msk.f32.gmra.mrb[10].mxu1 %vm1187_vm8, %v992_v55 }
 0x18b   :  { %2609 = vmatmul.mubr.msk.f32.gmra.mrb[10].mxu0 %vm1187_vm8, %v992_v55  ;;  %1819 = vmatprep.mubr.f32.mxu1 %v3205_v45 }
 0x18c   :  { %1497 = vmatprep.mubr.f32.mxu0 %v3205_v45 }
 0x18e   :  { %2626 = vmatmul.mubr.msk.f32.gmra.mrb[12].mxu1 %vm1187_vm8, %v995_v0 }
 0x18f   :  { %2610 = vmatmul.mubr.msk.f32.gmra.mrb[12].mxu0 %vm1187_vm8, %v995_v0  ;;  %1825 = vmatprep.mubr.f32.mxu1 %v3205_v45 }
 0x190   :  { %1503 = vmatprep.mubr.f32.mxu0 %v3205_v45 }
 0x192   :  { %2627 = vmatmul.mubr.msk.f32.gmra.mrb[14].mxu1 %vm1187_vm8, %v998_v14 }
 0x193   :  { %2611 = vmatmul.mubr.msk.f32.gmra.mrb[14].mxu0 %vm1187_vm8, %v998_v14  ;;  %1831 = vmatprep.mubr.f32.mxu1 %v3205_v45 }
 0x194   :  { %1509 = vmatprep.mubr.f32.mxu0 %v3205_v45 }
 0x196   :  { %2628 = vmatmul.mubr.msk.f32.gmra.mrb[16].mxu1 %vm1187_vm8, %v1001_v13 }
 0x197   :  { %2612 = vmatmul.mubr.msk.f32.gmra.mrb[16].mxu0 %vm1187_vm8, %v1001_v13  ;;  %1837 = vmatprep.mubr.f32.mxu1 %v3205_v45 }
 0x198   :  { %1515 = vmatprep.mubr.f32.mxu0 %v3205_v45 }
 0x19a   :  { %2629 = vmatmul.mubr.msk.f32.gmra.mrb[18].mxu1 %vm1187_vm8, %v1004_v60 }
 0x19b   :  { %2613 = vmatmul.mubr.msk.f32.gmra.mrb[18].mxu0 %vm1187_vm8, %v1004_v60  ;;  %1843 = vmatprep.mubr.f32.mxu1 %v3205_v45 }
 0x19c   :  { %1521 = vmatprep.mubr.f32.mxu0 %v3205_v45 }
 0x19e   :  { %2630 = vmatmul.mubr.msk.f32.gmra.mrb[20].mxu1 %vm1187_vm8, %v1007_v61 }
 0x19f   :  { %2614 = vmatmul.mubr.msk.f32.gmra.mrb[20].mxu0 %vm1187_vm8, %v1007_v61  ;;  %1849 = vmatprep.mubr.f32.mxu1 %v3205_v45 }
 0x1a0   :  { %1527 = vmatprep.mubr.f32.mxu0 %v3205_v45 }
 0x1a2   :  { %2631 = vmatmul.mubr.msk.f32.gmra.mrb[22].mxu1 %vm1187_vm8, %v1010_v5 }
 0x1a3   :  { %2615 = vmatmul.mubr.msk.f32.gmra.mrb[22].mxu0 %vm1187_vm8, %v1010_v5  ;;  %1855 = vmatprep.mubr.f32.mxu1 %v3205_v45 }
 0x1a4   :  { %1533 = vmatprep.mubr.f32.mxu0 %v3205_v45 }
 0x1a6   :  { %2632 = vmatmul.mubr.msk.f32.gmra.mrb[24].mxu1 %vm1187_vm8, %v1013_v11 }
 0x1a7   :  { %2616 = vmatmul.mubr.msk.f32.gmra.mrb[24].mxu0 %vm1187_vm8, %v1013_v11  ;;  %1861 = vmatprep.mubr.f32.mxu1 %v3205_v45  ;;  %v2320_v11 = vmul.f32 %v4486_v42, %v1990_v30 }
 0x1a8   :  { %1539 = vmatprep.mubr.f32.mxu0 %v3205_v45 }
 0x1aa   :  { %2633 = vmatmul.mubr.msk.f32.gmra.mrb[26].mxu1 %vm1187_vm8, %v1016_v62 }
 0x1ab   :  { %2617 = vmatmul.mubr.msk.f32.gmra.mrb[26].mxu0 %vm1187_vm8, %v1016_v62  ;;  %1867 = vmatprep.mubr.f32.mxu1 %v3205_v45 }
 0x1ac   :  { %1545 = vmatprep.mubr.f32.mxu0 %v3205_v45 }
 0x1ae   :  { %2634 = vmatmul.mubr.msk.f32.gmra.mrb[28].mxu1 %vm1187_vm8, %v1019_v8 }
 0x1af   :  { %2618 = vmatmul.mubr.msk.f32.gmra.mrb[28].mxu0 %vm1187_vm8, %v1019_v8  ;;  %1873 = vmatprep.mubr.f32.mxu1 %v3205_v45 }
 0x1b0   :  { %1551 = vmatprep.mubr.f32.mxu0 %v3205_v45  ;;  %v1996_v45 = vmul.f32 %v1988_v41, %v4451_v40 }
 0x1b2   :  { %2635 = vmatmul.mubr.msk.f32.gmra.mrb[30].mxu1 %vm1187_vm8, %v1022_v63 }
 0x1b3   :  { %2619 = vmatmul.mubr.msk.f32.gmra.mrb[30].mxu0 %vm1187_vm8, %v1022_v63 }
 0x249   :  { %v1785_v26 = vpop.f32.mrb[0].mxu1 }
 0x24a   :  { %v1463_v15 = vpop.f32.mrb[0].mxu0  ;;  %v2322_v27 = vadd.f32 %v2314_v24, %v1785_v26  ;;  %v1787_v31 = vpop.f32.mrb[1].mxu1 }
 0x24b   :  { %v2000_v54 = vadd.f32 %v1992_v9, %v1463_v15  ;;  %v1465_v36 = vpop.f32.mrb[1].mxu0  ;;  %v2323_v51 = vadd.f32 %v2315_v12, %v1787_v31  ;;  %v4495_v31 = vld [vmem:[%s4964_s3 + $0x60] sm:$0xff] }
 0x24c   :  { %v2668_v3 = vmul.f32 -1.442695, %v2322_v27  ;;  %v2001_v32 = vadd.f32 %v1993_v23, %v1465_v36  ;;  %4979 = vst [vmem:[#allocation7_spill] sm:$0xff] %v4495_v31 }
 0x24d   :  { %v2636_v49 = vmul.f32 -1.442695, %v2000_v54  ;;  %v2669_v39 = vmul.f32 -1.442695, %v2323_v51  ;;  %v1791_v10 = vpop.f32.mrb[2].mxu1 }
 0x24e   :  { %2941 = vpow2.f32 %v2668_v3  ;;  %v2637_v57 = vmul.f32 -1.442695, %v2001_v32  ;;  %v1469_v58 = vpop.f32.mrb[2].mxu0  ;;  %v2324_v46 = vadd.f32 %v2316_v22, %v1791_v10  ;;  %v1793_v21 = vpop.f32.mrb[3].mxu1  ;;  %v1991_v3 = vld [vmem:[%s4965_s5 + $0x38] sm:$0xff] }
 0x24f   :  { %2943 = vpow2.f32 %v2636_v49  ;;  %v2002_v1 = vadd.f32 %v1994_v37, %v1469_v58  ;;  %v1471_v33 = vpop.f32.mrb[3].mxu0  ;;  %v2325_v2 = vadd.f32 %v2317_v44, %v1793_v21  ;;  %v4502_v44 = vld [vmem:[%s4964_s3 + $0x68] sm:$0xff]  ;;  %v4513_v10 = vld [vmem:[%s4964_s3 + $0x78] sm:$0xff] }
 0x250   :  { %2945 = vpow2.f32 %v2637_v57  ;;  %v2670_v17 = vmul.f32 -1.442695, %v2324_v46  ;;  %v2003_v4 = vadd.f32 %v1995_v16, %v1471_v33  ;;  %4980 = vst [vmem:[#allocation8_spill] sm:$0xff] %v4502_v44  ;;  %4981 = vst [vmem:[#allocation9_spill] sm:$0xff] %v4513_v10  ;;  %v2057_v33 = vld [vmem:[%s4966_s6 + $0x8] sm:$0xff] }
 0x251   :  { %2947 = vpow2.f32 %v2669_v39  ;;  %v2638_v55 = vmul.f32 -1.442695, %v2002_v1  ;;  %v2671_v0 = vmul.f32 -1.442695, %v2325_v2  ;;  %v1797_v14 = vpop.f32.mrb[4].mxu1  ;;  %v1998_v39 = vmul.f32 %v1990_v30, %v4495_v31 }
 0x252   :  { %2949 = vpow2.f32 %v2670_v17  ;;  %v2639_v13 = vmul.f32 -1.442695, %v2003_v4  ;;  %v1475_v60 = vpop.f32.mrb[4].mxu0  ;;  %v2326_v61 = vadd.f32 %v2318_v47, %v1797_v14  ;;  %v1799_v5 = vpop.f32.mrb[5].mxu1  ;;  %v1999_v1 = vmul.f32 %v1991_v3, %v4502_v44 }
 0x253   :  { %2951 = vpow2.f32 %v2638_v55  ;;  %v2004_v62 = vadd.f32 %v1996_v45, %v1475_v60  ;;  %v1477_v8 = vpop.f32.mrb[5].mxu0  ;;  %v2327_v63 = vadd.f32 %v2319_v59, %v1799_v5  ;;  %v2056_v45 = vld [vmem:[%s4966_s6] sm:$0xff]  ;;  %v2321_v17 = vmul.f32 %v4513_v10, %v1991_v3  ;;  %v2058_v55 = vld [vmem:[%s4966_s6 + $0x10] sm:$0xff] }
 0x254   :  { %2953 = vpow2.f32 %v2639_v13  ;;  %v2672_v6 = vmul.f32 -1.442695, %v2326_v61  ;;  %v2005_v29 = vadd.f32 %v1997_v43, %v1477_v8  ;;  %v2064_v4 = vmul.f32 %v2056_v45, %v4402_v53 }
 0x255   :  { %2955 = vpow2.f32 %v2671_v0  ;;  %v2640_v24 = vmul.f32 -1.442695, %v2004_v62  ;;  %v2673_v9 = vmul.f32 -1.442695, %v2327_v63  ;;  %v1803_v12 = vpop.f32.mrb[6].mxu1  ;;  %v2386_v61 = vmul.f32 %v4397_v50, %v2056_v45 }
 0x256   :  { %2957 = vpow2.f32 %v2672_v6  ;;  %v2641_v18 = vmul.f32 -1.442695, %v2005_v29  ;;  %v1481_v23 = vpop.f32.mrb[6].mxu0  ;;  %v2328_v25 = vadd.f32 %v2320_v11, %v1803_v12  ;;  %v4490_v26 = vpop.f32.mrb[7].mxu1  ;;  %v2065_v8 = vmul.f32 %v2057_v33, %v4415_v19  ;;  %v2059_v12 = vld [vmem:[%s4966_s6 + $0x18] sm:$0xff] }
 0x257   :  { %2959 = vpow2.f32 %v2640_v24  ;;  %v1483_v15 = vpop.f32.mrb[7].mxu0  ;;  %v2006_v60 = vadd.f32 %v1998_v39, %v1481_v23  ;;  %v2387_v63 = vmul.f32 %v4410_v7, %v2057_v33 }
 0x258   :  { %v2942_v27 = vpop.eup %2941  ;;  %2961 = vpow2.f32 %v2641_v18  ;;  %v2674_v22 = vmul.f32 -1.442695, %v2328_v25  ;;  %v2007_v24 = vadd.f32 %v1999_v1, %v1483_v15 }
 0x259   :  { %v2944_v41 = vpop.eup %2943  ;;  %v2354_v54 = vadd.f32 1.0, %v2942_v27  ;;  %2963 = vpow2.f32 %v2673_v9  ;;  %v4497_v36 = vpop.f32.mrb[8].mxu1  ;;  %v2066_v9 = vmul.f32 %v2058_v55, %v4432_v35  ;;  %v2329_v27 = vadd.f32 %v2321_v17, %v4490_v26  ;;  %v2060_v26 = vld [vmem:[%s4966_s6 + $0x20] sm:$0xff] }
 0x25a   :  { %v2946_v51 = vpop.eup %2945  ;;  %v2032_v37 = vadd.f32 1.0, %v2944_v41  ;;  %2965 = vpow2.f32 %v2674_v22  ;;  %v1487_v32 = vpop.f32.mrb[8].mxu0  ;;  %v2388_v22 = vmul.f32 %v4426_v20, %v2058_v55  ;;  %v2394_v45 = vadd.f32 %v2386_v61, %v4497_v36 }
 0x25b   :  { %v4507_v16 = vpop.f32.mrb[9].mxu1  ;;  %v2948_v34 = vpop.eup %2947  ;;  %2967 = vrcp.f32 %v2354_v54  ;;  %v2033_v49 = vadd.f32 1.0, %v2946_v51  ;;  %v2072_v3 = vadd.f32 %v2064_v4, %v1487_v32 }
 0x25c   :  { %v1489_v57 = vpop.f32.mrb[9].mxu0  ;;  %v2950_v58 = vpop.eup %2949  ;;  %2969 = vrcp.f32 %v2032_v37  ;;  %v2355_v46 = vadd.f32 1.0, %v2948_v34  ;;  %v2642_v37 = vmul.f32 -1.442695, %v2006_v60  ;;  %v2395_v36 = vadd.f32 %v2387_v63, %v4507_v16 }
 0x25d   :  { %v2952_v21 = vpop.eup %2951  ;;  %2971 = vrcp.f32 %v2033_v49  ;;  %v2356_v47 = vadd.f32 1.0, %v2950_v58  ;;  %v4522_v2 = vpop.f32.mrb[10].mxu1  ;;  %v2067_v58 = vmul.f32 %v2059_v12, %v4445_v28  ;;  %v2073_v1 = vadd.f32 %v2065_v8, %v1489_v57 }
 0x25e   :  { %v2954_v59 = vpop.eup %2953  ;;  %2973 = vrcp.f32 %v2355_v46  ;;  %v2034_v30 = vadd.f32 1.0, %v2952_v21  ;;  %v1493_v43 = vpop.f32.mrb[10].mxu0  ;;  %v2068_v57 = vmul.f32 %v2060_v26, %v4451_v40  ;;  %v2396_v16 = vadd.f32 %v2388_v22, %v4522_v2 }
 0x25f   :  { %v4529_v0 = vpop.f32.mrb[11].mxu1  ;;  %v2956_v14 = vpop.eup %2955  ;;  %2975 = vrcp.f32 %v2356_v47  ;;  %v2035_v13 = vadd.f32 1.0, %v2954_v59  ;;  %v2643_v47 = vmul.f32 -1.442695, %v2007_v24  ;;  %v2675_v59 = vmul.f32 -1.442695, %v2329_v27 }
 0x260   :  { %v1495_v5 = vpop.f32.mrb[11].mxu0  ;;  %v2958_v11 = vpop.eup %2957  ;;  %2977 = vrcp.f32 %v2034_v30  ;;  %v2357_v62 = vadd.f32 1.0, %v2956_v14  ;;  %v2389_v30 = vmul.f32 %v4440_v52, %v2059_v12  ;;  %v2644_v14 = vmul.f32 -1.442695, %v2072_v3 }
 0x261   :  { %v2960_v6 = vpop.eup %2959  ;;  %2979 = vrcp.f32 %v2035_v13  ;;  %v2358_v29 = vadd.f32 1.0, %v2958_v11  ;;  %v4538_v18 = vpop.f32.mrb[12].mxu1  ;;  %v2074_v13 = vadd.f32 %v2066_v9, %v1493_v43  ;;  %v2676_v11 = vmul.f32 -1.442695, %v2394_v45 }
 0x262   :  { %v2962_v23 = vpop.eup %2961  ;;  %2981 = vrcp.f32 %v2357_v62  ;;  %v2036_v25 = vadd.f32 1.0, %v2960_v6  ;;  %v1499_v41 = vpop.f32.mrb[12].mxu0  ;;  %v2645_v8 = vmul.f32 -1.442695, %v2073_v1  ;;  %v2075_v63 = vadd.f32 %v2067_v58, %v1495_v5 }
 0x263   :  { %v4542_v54 = vpop.f32.mrb[13].mxu1  ;;  %v2964_v51 = vpop.eup %2963  ;;  %2983 = vrcp.f32 %v2358_v29  ;;  %v2037_v15 = vadd.f32 1.0, %v2962_v23  ;;  %v2390_v6 = vmul.f32 %v4461_v48, %v2060_v26  ;;  %v2677_v24 = vmul.f32 -1.442695, %v2395_v36 }
 0x264   :  { %v4544_v34 = vpop.f32.mrb[13].mxu0  ;;  %v2966_v49 = vpop.eup %2965  ;;  %2985 = vrcp.f32 %v2036_v25  ;;  %v2359_v39 = vadd.f32 1.0, %v2964_v51  ;;  %v2397_v9 = vadd.f32 %v2389_v30, %v4529_v0  ;;  %v2646_v25 = vmul.f32 -1.442695, %v2074_v13 }
 0x265   :  { %v4551_v46 = vpop.eup %2967  ;;  %2987 = vrcp.f32 %v2037_v15  ;;  %v2360_v21 = vadd.f32 1.0, %v2966_v49  ;;  %v4553_v32 = vpop.f32.mrb[14].mxu1  ;;  %v2076_v27 = vadd.f32 %v2068_v57, %v1499_v41  ;;  %v2678_v51 = vmul.f32 -1.442695, %v2396_v16 }
 0x266   :  { %v4555_v33 = vpop.eup %2969  ;;  %2989 = vrcp.f32 %v2359_v39  ;;  %v4559_v17 = vpop.f32.mrb[14].mxu0  ;;  %v2398_v0 = vadd.f32 %v2390_v6, %v4538_v18  ;;  %v2679_v39 = vmul.f32 -1.442695, %v2397_v9 }
 0x267   :  { %v4561_v4 = vpop.f32.mrb[15].mxu1  ;;  %v4563_v55 = vpop.eup %2971  ;;  %2991 = vpow2.f32 %v2642_v37  ;;  %v2647_v37 = vmul.f32 -1.442695, %v2075_v63  ;;  %v2648_v26 = vmul.f32 -1.442695, %v2076_v27 }
 0x268   :  { %v4566_v60 = vpop.f32.mrb[15].mxu0  ;;  %v4568_v61 = vpop.eup %2973  ;;  %2993 = vrcp.f32 %v2360_v21  ;;  %v2680_v1 = vmul.f32 -1.442695, %v2398_v0 }
 0x269   :  { %v4571_v62 = vpop.eup %2975  ;;  %2995 = vpow2.f32 %v2643_v47  ;;  %v4574_v29 = vpop.f32.mrb[16].mxu1 }
 0x26a   :  { %v4576_v43 = vpop.eup %2977  ;;  %2997 = vpow2.f32 %v2675_v59  ;;  %v4579_v12 = vpop.f32.mrb[16].mxu0 }
 0x26b   :  { %v4581_v23 = vpop.f32.mrb[17].mxu1  ;;  %v4583_v2 = vpop.eup %2979  ;;  %2999 = vpow2.f32 %v2644_v14  ;;  %v2061_v14 = vld [vmem:[%s4966_s6 + $0x28] sm:$0xff] }
 0x26c   :  { %v4585_v5 = vpop.f32.mrb[17].mxu0  ;;  %v4587_v22 = vpop.eup %2981  ;;  %3001 = vpow2.f32 %v2676_v11  ;;  %v2069_v9 = vmul.f32 %v2061_v14, %v4476_v56 }
 0x26d   :  { %4982 = vst [vmem:[#allocation10_spill] sm:$0xff] %v4587_v22  ;;  %v4589_v15 = vpop.eup %2983  ;;  %3003 = vpow2.f32 %v2645_v8  ;;  %v4592_v3 = vpop.f32.mrb[18].mxu1 }
 0x26e   :  { %4983 = vst [vmem:[#allocation11_spill] sm:$0xff] %v4589_v15  ;;  %v4594_v49 = vpop.eup %2985  ;;  %3005 = vpow2.f32 %v2677_v24  ;;  %v4596_v45 = vpop.f32.mrb[18].mxu0 }
 0x26f   :  { %4984 = vst [vmem:[#allocation12_spill] sm:$0xff] %v4594_v49  ;;  %v4598_v41 = vpop.f32.mrb[19].mxu1  ;;  %v4600_v58 = vpop.eup %2987  ;;  %3007 = vpow2.f32 %v2646_v25  ;;  %v2062_v25 = vld [vmem:[%s4966_s6 + $0x30] sm:$0xff] }
 0x270   :  { %4985 = vst [vmem:[#allocation13_spill] sm:$0xff] %v4600_v58  ;;  %v4602_v21 = vpop.f32.mrb[19].mxu0  ;;  %v4604_v47 = vpop.eup %2989  ;;  %3009 = vpow2.f32 %v2678_v51  ;;  %v2077_v58 = vadd.f32 %v2069_v9, %v4544_v34 }
 0x271   :  { %4986 = vst [vmem:[#allocation14_spill] sm:$0xff] %v4604_v47  ;;  %v2992_v18 = vpop.eup %2991  ;;  %3011 = vpow2.f32 %v2647_v37  ;;  %v4606_v59 = vpop.f32.mrb[20].mxu1 }
 0x272   :  { %v4608_v36 = vpop.eup %2993  ;;  %v2038_v30 = vadd.f32 1.0, %v2992_v18  ;;  %3013 = vpow2.f32 %v2679_v39  ;;  %v4613_v13 = vpop.f32.mrb[20].mxu0 }
 0x273   :  { %4987 = vst [vmem:[#allocation15_spill] sm:$0xff] %v4608_v36  ;;  %v4615_v57 = vpop.f32.mrb[21].mxu1  ;;  %v2996_v11 = vpop.eup %2995  ;;  %3015 = vpow2.f32 %v2648_v26 }
 0x274   :  { %v4617_v16 = vpop.f32.mrb[21].mxu0  ;;  %v2998_v8 = vpop.eup %2997  ;;  %3017 = vrcp.f32 %v2038_v30  ;;  %v2039_v63 = vadd.f32 1.0, %v2996_v11  ;;  %v2063_v30 = vld [vmem:[%s4966_s6 + $0x38] sm:$0xff] }
 0x275   :  { %v3000_v6 = vpop.eup %2999  ;;  %v2361_v24 = vadd.f32 1.0, %v2998_v8  ;;  %3019 = vpow2.f32 %v2680_v1  ;;  %v4623_v27 = vpop.f32.mrb[22].mxu1  ;;  %v2391_v1 = vmul.f32 %v4470_v38, %v2061_v14  ;;  %v2071_v38 = vmul.f32 %v2063_v30, %v4502_v44 }
 0x276   :  { %v3002_v51 = vpop.eup %3001  ;;  %3021 = vrcp.f32 %v2039_v63  ;;  %v2104_v37 = vadd.f32 1.0, %v3000_v6  ;;  %v4625_v0 = vpop.f32.mrb[22].mxu0  ;;  %v2070_v63 = vmul.f32 %v2062_v25, %v4495_v31  ;;  %v2393_v34 = vmul.f32 %v4513_v10, %v2063_v30 }
 0x277   :  { %v4627_v39 = vpop.f32.mrb[23].mxu1  ;;  %v3004_v26 = vpop.eup %3003  ;;  %3023 = vrcp.f32 %v2361_v24  ;;  %v2426_v18 = vadd.f32 1.0, %v3002_v51  ;;  %v2392_v24 = vmul.f32 %v4486_v42, %v2062_v25  ;;  %v2649_v42 = vmul.f32 -1.442695, %v2077_v58 }
 0x278   :  { %v4633_v11 = vpop.f32.mrb[23].mxu0  ;;  %v3006_v8 = vpop.eup %3005  ;;  %3025 = vrcp.f32 %v2104_v37  ;;  %v2105_v36 = vadd.f32 1.0, %v3004_v26 }
 0x279   :  { %v3008_v6 = vpop.eup %3007  ;;  %3027 = vrcp.f32 %v2426_v18  ;;  %v2427_v47 = vadd.f32 1.0, %v3006_v8  ;;  %v4638_v51 = vpop.f32.mrb[24].mxu1  ;;  %v2399_v18 = vadd.f32 %v2391_v1, %v4542_v54  ;;  %v2400_v56 = vadd.f32 %v2392_v24, %v4553_v32 }
 0x27a   :  { %v3010_v14 = vpop.eup %3009  ;;  %3029 = vrcp.f32 %v2105_v36  ;;  %v2106_v15 = vadd.f32 1.0, %v3008_v6  ;;  %v4641_v49 = vpop.f32.mrb[24].mxu0  ;;  %v2078_v36 = vadd.f32 %v2070_v63, %v4559_v17  ;;  %v2079_v1 = vadd.f32 %v2071_v38, %v4566_v60 }
 0x27b   :  { %v4643_v37 = vpop.f32.mrb[25].mxu1  ;;  %v3012_v26 = vpop.eup %3011  ;;  %3031 = vrcp.f32 %v2427_v47  ;;  %v2428_v31 = vadd.f32 1.0, %v3010_v14  ;;  %v2681_v17 = vmul.f32 -1.442695, %v2399_v18  ;;  %v2682_v38 = vmul.f32 -1.442695, %v2400_v56 }
 0x27c   :  { %v4647_v9 = vpop.f32.mrb[25].mxu0  ;;  %v3014_v25 = vpop.eup %3013  ;;  %3033 = vrcp.f32 %v2106_v15  ;;  %v2107_v8 = vadd.f32 1.0, %v3012_v26  ;;  %v2650_v24 = vmul.f32 -1.442695, %v2078_v36 }
 0x27d   :  { %v3016_v6 = vpop.eup %3015  ;;  %3035 = vrcp.f32 %v2428_v31  ;;  %v2429_v44 = vadd.f32 1.0, %v3014_v25  ;;  %v4651_v22 = vpop.f32.mrb[26].mxu1  ;;  %v2401_v31 = vadd.f32 %v2393_v34, %v4561_v4 }
 0x27e   :  { %v4653_v47 = vpop.eup %3017  ;;  %3037 = vrcp.f32 %v2107_v8  ;;  %v2108_v54 = vadd.f32 1.0, %v3016_v6  ;;  %v4656_v30 = vpop.f32.mrb[26].mxu0  ;;  %v2651_v8 = vmul.f32 -1.442695, %v2079_v1 }
 0x27f   :  { %v4658_v15 = vpop.f32.mrb[27].mxu1  ;;  %v3020_v14 = vpop.eup %3019  ;;  %3039 = vrcp.f32 %v2429_v44  ;;  %v2683_v34 = vmul.f32 -1.442695, %v2401_v31 }
 0x280   :  { %v4661_v58 = vpop.f32.mrb[27].mxu0  ;;  %v4663_v32 = vpop.eup %3021  ;;  %3041 = vrcp.f32 %v2108_v54  ;;  %v2430_v63 = vadd.f32 1.0, %v3020_v14 }
 0x281   :  { %4988 = vst [vmem:[#allocation16_spill] sm:$0xff] %v4663_v32  ;;  %v4665_v26 = vpop.eup %3023  ;;  %3043 = vpow2.f32 %v2649_v42  ;;  %v4667_v60 = vpop.f32.mrb[28].mxu1 }
 0x282   :  { %4989 = vst [vmem:[#allocation17_spill] sm:$0xff] %v4665_v26  ;;  %v3026_v25 = vpop.eup %3025  ;;  %3045 = vrcp.f32 %v2430_v63  ;;  %v4669_v44 = vpop.f32.mrb[28].mxu0 }
 0x283   :  { %v4671_v18 = vpop.f32.mrb[29].mxu1  ;;  %v3028_v4 = vpop.eup %3027  ;;  %3047 = vpow2.f32 %v2681_v17 }
 0x284   :  { %4990 = vst [vmem:[#allocation18_spill] sm:$0xff] %v4671_v18  ;;  %v4673_v6 = vpop.f32.mrb[29].mxu0  ;;  %v3030_v54 = vpop.eup %3029  ;;  %3049 = vpow2.f32 %v2650_v24 }
 0x285   :  { %v3032_v36 = vpop.eup %3031  ;;  %3051 = vpow2.f32 %v2682_v38  ;;  %v4675_v42 = vpop.f32.mrb[30].mxu1 }
 0x286   :  { %4991 = vst [vmem:[#allocation19_spill] sm:$0xff] %v4675_v42  ;;  %v3034_v56 = vpop.eup %3033  ;;  %3053 = vpow2.f32 %v2651_v8  ;;  %v4677_v14 = vpop.f32.mrb[30].mxu0 }
 0x287   :  { %4992 = vst [vmem:[#allocation20_spill] sm:$0xff] %v4677_v14  ;;  %v4679_v1 = vpop.f32.mrb[31].mxu1  ;;  %v3036_v63 = vpop.eup %3035  ;;  %3055 = vpow2.f32 %v2683_v34 }
 0x288   :  { %4993 = vst [vmem:[#allocation21_spill] sm:$0xff] %v4679_v1  ;;  %v4681_v26 = vpop.f32.mrb[31].mxu0  ;;  %v3038_v17 = vpop.eup %3037  ;;  %3057 = vtanh.f32 %v4579_v12 }
 0x289   :  { %4994 = vst [vmem:[#allocation22_spill] sm:$0xff] %v4681_v26  ;;  %v4684_v31 = vpop.eup %3039  ;;  %3059 = vtanh.f32 %v4574_v29 }
 0x28a   :  { %v4687_v24 = vpop.eup %3041  ;;  %3061 = vtanh.f32 %v4585_v5 }
 0x28b   :  { %v3044_v38 = vpop.eup %3043  ;;  %3063 = vtanh.f32 %v4581_v23 }
 0x28c   :  { %v4691_v8 = vpop.eup %3045  ;;  %v2109_v1 = vadd.f32 1.0, %v3044_v38  ;;  %3065 = vtanh.f32 %v4596_v45  ;;  %v2128_v38 = vmul.f32 %v3026_v25, %v4402_v53  ;;  %v2451_v53 = vmul.f32 %v3032_v36, %v4410_v7 }
 0x28d   :  { %v3048_v34 = vpop.eup %3047  ;;  %3067 = vtanh.f32 %v4592_v3  ;;  %v2450_v3 = vmul.f32 %v3028_v4, %v4397_v50 }
 0x28e   :  { %v3050_v12 = vpop.eup %3049  ;;  %3069 = vrcp.f32 %v2109_v1  ;;  %v2431_v26 = vadd.f32 1.0, %v3048_v34  ;;  %v2129_v34 = vmul.f32 %v3030_v54, %v4415_v19  ;;  %v2452_v19 = vmul.f32 %v3036_v63, %v4426_v20 }
 0x28f   :  { %v3052_v42 = vpop.eup %3051  ;;  %v2110_v29 = vadd.f32 1.0, %v3050_v12  ;;  %3071 = vtanh.f32 %v4602_v21 }
 0x290   :  { %v3054_v14 = vpop.eup %3053  ;;  %3073 = vrcp.f32 %v2431_v26  ;;  %v2432_v5 = vadd.f32 1.0, %v3052_v42  ;;  %v2160_v26 = vld [vmem:[%s4967_s7] sm:$0xff] }
 0x291   :  { %v3056_v10 = vpop.eup %3055  ;;  %3075 = vrcp.f32 %v2110_v29  ;;  %v2111_v23 = vadd.f32 1.0, %v3054_v14 }
 0x292   :  { %v3058_v32 = vpop.eup %3057  ;;  %3077 = vrcp.f32 %v2432_v5  ;;  %v2433_v45 = vadd.f32 1.0, %v3056_v10  ;;  %v2130_v10 = vmul.f32 %v3034_v56, %v4432_v35  ;;  %v2131_v35 = vmul.f32 %v3038_v17, %v4445_v28 }
 0x293   :  { %v3060_v18 = vpop.eup %3059  ;;  %3079 = vrcp.f32 %v2111_v23  ;;  %v2144_v1 = vmul.f32 %v3058_v32, %v4555_v33 }
 0x294   :  { %v3062_v21 = vpop.eup %3061  ;;  %3081 = vrcp.f32 %v2433_v45  ;;  %v2466_v42 = vmul.f32 %v3060_v18, %v4551_v46  ;;  %v2161_v46 = vld [vmem:[%s4967_s7 + $0x8] sm:$0xff] }
 0x295   :  { %v3064_v25 = vpop.eup %3063  ;;  %3083 = vtanh.f32 %v4598_v41  ;;  %v2152_v50 = vadd.f32 %v2144_v1, %v2128_v38  ;;  %v2145_v33 = vmul.f32 %v3062_v21, %v4563_v55  ;;  %v2453_v1 = vmul.f32 %v4684_v31, %v4440_v52 }
 0x296   :  { %v3066_v32 = vpop.eup %3065  ;;  %3085 = vtanh.f32 %v4613_v13  ;;  %v4710_v4 = vadd.f32 %v2466_v42, %v2450_v3  ;;  %v2467_v7 = vmul.f32 %v3064_v25, %v4568_v61  ;;  %v2162_v61 = vld [vmem:[%s4967_s7 + $0x10] sm:$0xff]  ;;  %v2163_v3 = vld [vmem:[%s4967_s7 + $0x18] sm:$0xff] }
 0x297   :  { %v3068_v18 = vpop.eup %3067  ;;  %3087 = vtanh.f32 %v4606_v59  ;;  %v2168_v41 = vmul.f32 %v2160_v26, %v2152_v50  ;;  %2256 = vst [vmem:[%s4968_s9] sm:$0xff] %v2152_v50  ;;  %v4721_v20 = vadd.f32 %v2145_v33, %v2129_v34  ;;  %v2146_v55 = vmul.f32 %v3066_v32, %v4576_v43  ;;  %v2164_v32 = vld [vmem:[%s4967_s7 + $0x20] sm:$0xff] }
 0x298   :  { %v3070_v13 = vpop.eup %3069  ;;  %3089 = vtanh.f32 %v4617_v16  ;;  %v2490_v54 = vmul.f32 %v4710_v4, %v2160_v26  ;;  %2700 = vst [vmem:[%s4968_s9 + $0x10] sm:$0xff] %v4710_v4  ;;  %v4730_v28 = vadd.f32 %v2467_v7, %v2451_v53  ;;  %v2468_v59 = vmul.f32 %v3068_v18, %v4571_v62  ;;  %v4995_v26 = vld [vmem:[#allocation10_spill] sm:$0xff]  ;;  %v4996_v53 = vld [vmem:[#allocation5_spill] sm:$0xff] }
 0x299   :  { %v3072_v36 = vpop.eup %3071  ;;  %3091 = vtanh.f32 %v4615_v57  ;;  %v2176_v43 = vadd.f32 %v2168_v41, %v4641_v49  ;;  %v2169_v16 = vmul.f32 %v2161_v46, %v4721_v20  ;;  %2257 = vst [vmem:[%s4968_s9 + $0x8] sm:$0xff] %v4721_v20  ;;  %v4743_v56 = vadd.f32 %v2146_v55, %v2130_v10  ;;  %v5000_v55 = vld [vmem:[#allocation13_spill] sm:$0xff] }
 0x29a   :  { %v3074_v14 = vpop.eup %3073  ;;  %3093 = vtanh.f32 %v4625_v0  ;;  %v2498_v63 = vadd.f32 %v2490_v54, %v4638_v51  ;;  %v2491_v62 = vmul.f32 %v4730_v28, %v2161_v46  ;;  %2701 = vst [vmem:[%s4968_s9 + $0x18] sm:$0xff] %v4730_v28  ;;  %v4752_v49 = vadd.f32 %v2468_v59, %v2452_v19  ;;  %v4999_v46 = vld [vmem:[#allocation11_spill] sm:$0xff] }
 0x29b   :  { %v3076_v57 = vpop.eup %3075  ;;  %3095 = vtanh.f32 %v4623_v27  ;;  %v2652_v17 = vmul.f32 -1.442695, %v2176_v43  ;;  %v2177_v12 = vadd.f32 %v2169_v16, %v4647_v9  ;;  %v2170_v29 = vmul.f32 %v2162_v61, %v4743_v56  ;;  %2258 = vst [vmem:[%s4968_s9 + $0x20] sm:$0xff] %v4743_v56  ;;  %v5001_v54 = vld [vmem:[#allocation7_spill] sm:$0xff]  ;;  %v5002_v16 = vld [vmem:[#allocation14_spill] sm:$0xff] }
 0x29c   :  { %v4761_v0 = vpop.eup %3077  ;;  %3097 = vtanh.f32 %v4633_v11  ;;  %v2684_v51 = vmul.f32 -1.442695, %v2498_v63  ;;  %v2499_v5 = vadd.f32 %v2491_v62, %v4643_v37  ;;  %v2492_v23 = vmul.f32 %v4752_v49, %v2162_v61  ;;  %2702 = vst [vmem:[%s4968_s9 + $0x30] sm:$0xff] %v4752_v49 }
 0x29d   :  { %v4770_v27 = vpop.eup %3079  ;;  %3099 = vtanh.f32 %v4627_v39  ;;  %v2178_v9 = vadd.f32 %v2170_v29, %v4656_v30  ;;  %v2147_v38 = vmul.f32 %v3072_v36, %v4583_v2  ;;  %v2653_v11 = vmul.f32 -1.442695, %v2177_v12 }
 0x29e   :  { %v4775_v45 = vpop.eup %3081  ;;  %3101 = vpow2.f32 %v2652_v17  ;;  %v2500_v37 = vadd.f32 %v2492_v23, %v4651_v22  ;;  %v2132_v2 = vmul.f32 %v4687_v24, %v4451_v40  ;;  %v2454_v30 = vmul.f32 %v4691_v8, %v4461_v48  ;;  %v4997_v40 = vld [vmem:[#allocation12_spill] sm:$0xff] }
 0x29f   :  { %v3084_v34 = vpop.eup %3083  ;;  %3103 = vtanh.f32 %v2152_v50  ;;  %v4783_v39 = vadd.f32 %v2147_v38, %v2131_v35  ;;  %v2685_v22 = vmul.f32 -1.442695, %v2499_v5  ;;  %v2133_v10 = vmul.f32 %v3070_v13, %v4996_v53  ;;  %v4998_v24 = vld [vmem:[#allocation4_spill] sm:$0xff]  ;;  %v5006_v53 = vld [vmem:[#allocation15_spill] sm:$0xff] }
 0x2a0   :  { %v3086_v21 = vpop.eup %3085  ;;  %3105 = vpow2.f32 %v2684_v51  ;;  %v2469_v42 = vmul.f32 %v3084_v34, %v4995_v26  ;;  %v2654_v33 = vmul.f32 -1.442695, %v2178_v9  ;;  %v2455_v48 = vmul.f32 %v3074_v14, %v4998_v24  ;;  %v5004_v34 = vld [vmem:[#allocation8_spill] sm:$0xff]  ;;  %v5008_v24 = vld [vmem:[#allocation9_spill] sm:$0xff] }
 0x2a1   :  { %v3088_v25 = vpop.eup %3087  ;;  %v2171_v52 = vmul.f32 %v2163_v3, %v4783_v39  ;;  %2259 = vst [vmem:[%s4968_s9 + $0x28] sm:$0xff] %v4783_v39  ;;  %v2148_v31 = vmul.f32 %v3086_v21, %v4997_v40  ;;  %3107 = vpow2.f32 %v2653_v11  ;;  %v2686_v50 = vmul.f32 -1.442695, %v2500_v37 }
 0x2a2   :  { %v3090_v8 = vpop.eup %3089  ;;  %v4798_v19 = vadd.f32 %v2469_v42, %v2453_v1  ;;  %v2470_v7 = vmul.f32 %v3088_v25, %v4999_v46  ;;  %v2134_v61 = vmul.f32 %v3076_v57, %v5001_v54  ;;  %3109 = vpow2.f32 %v2685_v22  ;;  %v5005_v22 = vld [vmem:[#allocation18_spill] sm:$0xff]  ;;  %v5010_v46 = vld [vmem:[#allocation17_spill] sm:$0xff] }
 0x2a3   :  { %v3092_v35 = vpop.eup %3091  ;;  %v2179_v18 = vadd.f32 %v2171_v52, %v4661_v58  ;;  %v4805_v41 = vadd.f32 %v2148_v31, %v2132_v2  ;;  %v2149_v13 = vmul.f32 %v3090_v8, %v5000_v55  ;;  %v2165_v58 = vld [vmem:[%s4967_s7 + $0x28] sm:$0xff]  ;;  %3111 = vtanh.f32 %v4710_v4  ;;  %v2167_v31 = vld [vmem:[%s4967_s7 + $0x38] sm:$0xff]  ;;  %v5009_v8 = vld [vmem:[#allocation20_spill] sm:$0xff] }
 0x2a4   :  { %v3094_v59 = vpop.eup %3093  ;;  %v2493_v36 = vmul.f32 %v4798_v19, %v2163_v3  ;;  %2703 = vst [vmem:[%s4968_s9 + $0x38] sm:$0xff] %v4798_v19  ;;  %v4814_v43 = vadd.f32 %v2470_v7, %v2454_v30  ;;  %v2471_v14 = vmul.f32 %v3092_v35, %v5002_v16  ;;  %3113 = vpow2.f32 %v2654_v33 }
 0x2a5   :  { %v3096_v63 = vpop.eup %3095  ;;  %v2655_v62 = vmul.f32 -1.442695, %v2179_v18  ;;  %v2172_v57 = vmul.f32 %v2164_v32, %v4805_v41  ;;  %2260 = vst [vmem:[%s4968_s9 + $0x40] sm:$0xff] %v4805_v41  ;;  %v4826_v17 = vadd.f32 %v2149_v13, %v2133_v10  ;;  %3115 = vtanh.f32 %v4721_v20 }
 0x2a6   :  { %v3098_v12 = vpop.eup %3097  ;;  %v2501_v29 = vadd.f32 %v2493_v36, %v4658_v15  ;;  %v2494_v51 = vmul.f32 %v4814_v43, %v2164_v32  ;;  %2704 = vst [vmem:[%s4968_s9 + $0x50] sm:$0xff] %v4814_v43  ;;  %v4834_v4 = vadd.f32 %v2471_v14, %v2455_v48  ;;  %v2150_v15 = vmul.f32 %v3094_v59, %v4653_v47  ;;  %v5011_v36 = vld [vmem:[#allocation19_spill] sm:$0xff] }
 0x2a7   :  { %v3100_v5 = vpop.eup %3099  ;;  %v2180_v23 = vadd.f32 %v2172_v57, %v4669_v44  ;;  %v2173_v9 = vmul.f32 %v2165_v58, %v4826_v17  ;;  %2261 = vst [vmem:[%s4968_s9 + $0x48] sm:$0xff] %v4826_v17  ;;  %3117 = vpow2.f32 %v2686_v50  ;;  %v5003_v44 = vld [vmem:[#allocation6_spill] sm:$0xff]  ;;  %v2135_v2 = vmul.f32 %v4770_v27, %v5004_v34  ;;  %v5007_v27 = vld [vmem:[#allocation16_spill] sm:$0xff] }
 0x2a8   :  { %v3102_v38 = vpop.eup %3101  ;;  %v2502_v11 = vadd.f32 %v2494_v51, %v4667_v60  ;;  %v2495_v37 = vmul.f32 %v4834_v4, %v2165_v58  ;;  %2705 = vst [vmem:[%s4968_s9 + $0x58] sm:$0xff] %v4834_v4  ;;  %v2456_v20 = vmul.f32 %v4761_v0, %v5003_v44  ;;  %3119 = vtanh.f32 %v4730_v28  ;;  %v2166_v60 = vld [vmem:[%s4967_s7 + $0x30] sm:$0xff]  ;;  %v5013_v51 = vld [vmem:[#allocation21_spill] sm:$0xff] }
 0x2a9   :  { %v3104_v3 = vpop.eup %3103  ;;  %v2208_v1 = vadd.f32 1.0, %v3102_v38  ;;  %v2181_v47 = vadd.f32 %v2173_v9, %v4673_v6  ;;  %3121 = vpow2.f32 %v2655_v62  ;;  %v2687_v21 = vmul.f32 -1.442695, %v2501_v29 }
 0x2aa   :  { %v3106_v30 = vpop.eup %3105  ;;  %v2503_v26 = vadd.f32 %v2495_v37, %v5005_v22  ;;  %v4860_v42 = vadd.f32 %v2150_v15, %v2134_v61  ;;  %v2472_v28 = vmul.f32 %v3096_v63, %v5006_v53  ;;  %v2656_v6 = vmul.f32 -1.442695, %v2180_v23  ;;  %v5012_v63 = vld [vmem:[#allocation22_spill] sm:$0xff] }
 0x2ab   :  { %3123 = vrcp.f32 %v2208_v1  ;;  %v2530_v0 = vadd.f32 1.0, %v3106_v30  ;;  %v3108_v10 = vpop.eup %3107  ;;  %v2151_v33 = vmul.f32 %v3098_v12, %v5007_v27  ;;  %v2473_v7 = vmul.f32 %v3100_v5, %v5010_v46 }
 0x2ac   :  { %3125 = vtanh.f32 %v4743_v56  ;;  %v2174_v25 = vmul.f32 %v2166_v60, %v4860_v42  ;;  %2262 = vst [vmem:[%s4968_s9 + $0x60] sm:$0xff] %v4860_v42  ;;  %v2209_v52 = vadd.f32 1.0, %v3108_v10  ;;  %v4870_v40 = vadd.f32 %v2472_v28, %v2456_v20  ;;  %v3110_v48 = vpop.eup %3109 }
 0x2ad   :  { %3127 = vrcp.f32 %v2530_v0  ;;  %v2457_v56 = vmul.f32 %v4775_v45, %v5008_v24  ;;  %v4878_v32 = vadd.f32 %v2151_v33, %v2135_v2  ;;  %v3112_v35 = vpop.eup %3111  ;;  %v2531_v18 = vadd.f32 1.0, %v3110_v48 }
 0x2ae   :  { %3129 = vpow2.f32 %v2687_v21  ;;  %v2182_v50 = vadd.f32 %v2174_v25, %v5009_v8  ;;  %v2496_v55 = vmul.f32 %v4870_v40, %v2166_v60  ;;  %2706 = vst [vmem:[%s4968_s9 + $0x70] sm:$0xff] %v4870_v40  ;;  %v3114_v13 = vpop.eup %3113  ;;  %v2688_v14 = vmul.f32 -1.442695, %v2502_v11 }
 0x2af   :  { %3131 = vrcp.f32 %v2209_v52  ;;  %v2175_v45 = vmul.f32 %v2167_v31, %v4878_v32  ;;  %2263 = vst [vmem:[%s4968_s9 + $0x68] sm:$0xff] %v4878_v32  ;;  %v4892_v54 = vadd.f32 %v2473_v7, %v2457_v56  ;;  %v3116_v61 = vpop.eup %3115  ;;  %v2210_v59 = vadd.f32 1.0, %v3114_v13 }
 0x2b0   :  { %3133 = vtanh.f32 %v4752_v49  ;;  %v2504_v58 = vadd.f32 %v2496_v55, %v5011_v36  ;;  %v2657_v15 = vmul.f32 -1.442695, %v2181_v47  ;;  %v2689_v1 = vmul.f32 -1.442695, %v2503_v26 }
 0x2b1   :  { %3135 = vrcp.f32 %v2531_v18  ;;  %v3118_v16 = vpop.eup %3117  ;;  %v2183_v62 = vadd.f32 %v2175_v45, %v5012_v63  ;;  %v2497_v49 = vmul.f32 %v4892_v54, %v2167_v31  ;;  %2707 = vst [vmem:[%s4968_s9 + $0x78] sm:$0xff] %v4892_v54 }
 0x2b2   :  { %3137 = vpow2.f32 %v2656_v6  ;;  %v3120_v57 = vpop.eup %3119  ;;  %v2532_v12 = vadd.f32 1.0, %v3118_v16  ;;  %v2690_v0 = vmul.f32 -1.442695, %v2504_v58 }
 0x2b3   :  { %3139 = vrcp.f32 %v2210_v59  ;;  %v3122_v29 = vpop.eup %3121  ;;  %v2505_v5 = vadd.f32 %v2497_v49, %v5013_v51  ;;  %v2659_v25 = vmul.f32 -1.442695, %v2183_v62 }
 0x2b4   :  { %3141 = vtanh.f32 %v4783_v39  ;;  %v2211_v9 = vadd.f32 1.0, %v3122_v29 }
 0x2b5   :  { %v3124_v23 = vpop.eup %3123  ;;  %3143 = vrcp.f32 %v2532_v12  ;;  %v2691_v31 = vmul.f32 -1.442695, %v2505_v5 }
 0x2b6   :  { %v3126_v38 = vpop.eup %3125  ;;  %v2240_v11 = vmul.f32 %v3124_v23, %v3104_v3  ;;  %3145 = vpow2.f32 %v2688_v14  ;;  %v2658_v3 = vmul.f32 -1.442695, %v2182_v50 }
 0x2b7   :  { %v3128_v37 = vpop.eup %3127  ;;  %3147 = vrcp.f32 %v2211_v9 }
 0x2b8   :  { %v3130_v44 = vpop.eup %3129  ;;  %2248 = vst [vmem:[%s4969_s8] sm:$0xff] %v2240_v11  ;;  %v2562_v20 = vmul.f32 %v3128_v37, %v3112_v35  ;;  %3149 = vpow2.f32 %v2657_v15 }
 0x2b9   :  { %v3132_v60 = vpop.eup %3131  ;;  %v2533_v39 = vadd.f32 1.0, %v3130_v44  ;;  %3151 = vtanh.f32 %v4798_v19 }
 0x2ba   :  { %v3134_v34 = vpop.eup %3133  ;;  %2692 = vst [vmem:[%s4969_s8 + $0x10] sm:$0xff] %v2562_v20  ;;  %v2241_v47 = vmul.f32 %v3132_v60, %v3116_v61 }
 0x2bb   :  { %v3136_v2 = vpop.eup %3135  ;;  %3153 = vrcp.f32 %v2533_v39 }
 0x2bc   :  { %v3138_v30 = vpop.eup %3137  ;;  %2249 = vst [vmem:[%s4969_s8 + $0x8] sm:$0xff] %v2241_v47  ;;  %v2563_v21 = vmul.f32 %v3136_v2, %v3120_v57  ;;  %3155 = vpow2.f32 %v2689_v1 }
 0x2bd   :  { %v3140_v22 = vpop.eup %3139  ;;  %v2212_v26 = vadd.f32 1.0, %v3138_v30  ;;  %3157 = vtanh.f32 %v4805_v41 }
 0x2be   :  { %v3142_v53 = vpop.eup %3141  ;;  %2693 = vst [vmem:[%s4969_s8 + $0x18] sm:$0xff] %v2563_v21  ;;  %v2242_v19 = vmul.f32 %v3140_v22, %v3126_v38  ;;  %3159 = vpow2.f32 %v2658_v3 }
 0x2bf   :  { %v3144_v28 = vpop.eup %3143  ;;  %3161 = vrcp.f32 %v2212_v26 }
 0x2c0   :  { %v3146_v10 = vpop.eup %3145  ;;  %2250 = vst [vmem:[%s4969_s8 + $0x20] sm:$0xff] %v2242_v19  ;;  %v2564_v6 = vmul.f32 %v3144_v28, %v3134_v34  ;;  %3163 = vpow2.f32 %v2690_v0 }
 0x2c1   :  { %v3148_v27 = vpop.eup %3147  ;;  %v2534_v33 = vadd.f32 1.0, %v3146_v10  ;;  %3165 = vtanh.f32 %v4814_v43 }
 0x2c2   :  { %2694 = vst [vmem:[%s4969_s8 + $0x30] sm:$0xff] %v2564_v6  ;;  %v2243_v41 = vmul.f32 %v3148_v27, %v3142_v53  ;;  %v3150_v52 = vpop.eup %3149 }
 0x2c3   :  { %3167 = vrcp.f32 %v2534_v33  ;;  %v3152_v24 = vpop.eup %3151  ;;  %v2213_v56 = vadd.f32 1.0, %v3150_v52 }
 0x2c4   :  { %2251 = vst [vmem:[%s4969_s8 + $0x28] sm:$0xff] %v2243_v41  ;;  %3169 = vpow2.f32 %v2659_v25 }
 0x2c5   :  { %v3154_v48 = vpop.eup %3153  ;;  %3171 = vtanh.f32 %v4826_v17 }
 0x2c6   :  { %v3156_v8 = vpop.eup %3155  ;;  %v2565_v50 = vmul.f32 %v3154_v48, %v3152_v24  ;;  %3173 = vrcp.f32 %v2213_v56 }
 0x2c7   :  { %v3158_v46 = vpop.eup %3157  ;;  %v2535_v7 = vadd.f32 1.0, %v3156_v8  ;;  %3175 = vpow2.f32 %v2691_v31 }
 0x2c8   :  { %v3160_v43 = vpop.eup %3159  ;;  %2695 = vst [vmem:[%s4969_s8 + $0x38] sm:$0xff] %v2565_v50  ;;  %3177 = vtanh.f32 %v4834_v4 }
 0x2c9   :  { %v3162_v35 = vpop.eup %3161  ;;  %3179 = vrcp.f32 %v2535_v7  ;;  %v2214_v18 = vadd.f32 1.0, %v3160_v43 }
 0x2ca   :  { %v2244_v55 = vmul.f32 %v3162_v35, %v3158_v46  ;;  %3181 = vtanh.f32 %v4860_v42  ;;  %v3164_v17 = vpop.eup %3163 }
 0x2cb   :  { %3183 = vrcp.f32 %v2214_v18  ;;  %v3166_v13 = vpop.eup %3165  ;;  %v2536_v45 = vadd.f32 1.0, %v3164_v17 }
 0x2cc   :  { %2252 = vst [vmem:[%s4969_s8 + $0x40] sm:$0xff] %v2244_v55  ;;  %3185 = vtanh.f32 %v4870_v40 }
 0x2cd   :  { %v3168_v61 = vpop.eup %3167  ;;  %3187 = vrcp.f32 %v2536_v45 }
 0x2ce   :  { %v3170_v59 = vpop.eup %3169  ;;  %v2566_v36 = vmul.f32 %v3168_v61, %v3166_v13  ;;  %3189 = vtanh.f32 %v4878_v32 }
 0x2cf   :  { %v3172_v4 = vpop.eup %3171  ;;  %v2215_v58 = vadd.f32 1.0, %v3170_v59 }
 0x2d0   :  { %v3174_v16 = vpop.eup %3173  ;;  %2696 = vst [vmem:[%s4969_s8 + $0x50] sm:$0xff] %v2566_v36 }
 0x2d1   :  { %v3176_v42 = vpop.eup %3175  ;;  %v2245_v14 = vmul.f32 %v3174_v16, %v3172_v4  ;;  %3191 = vrcp.f32 %v2215_v58 }
 0x2d2   :  { %v3178_v63 = vpop.eup %3177  ;;  %v2537_v62 = vadd.f32 1.0, %v3176_v42  ;;  %3193 = vtanh.f32 %v4892_v54 }
 0x2d3   :  { %v3180_v49 = vpop.eup %3179  ;;  %2253 = vst [vmem:[%s4969_s8 + $0x48] sm:$0xff] %v2245_v14 }
 0x2d4   :  { %v3182_v40 = vpop.eup %3181  ;;  %v2567_v57 = vmul.f32 %v3180_v49, %v3178_v63  ;;  %3195 = vrcp.f32 %v2537_v62 }
 0x2d5   :  { %v3184_v12 = vpop.eup %3183 }
 0x2d6   :  { %2697 = vst [vmem:[%s4969_s8 + $0x58] sm:$0xff] %v2567_v57  ;;  %v2246_v32 = vmul.f32 %v3184_v12, %v3182_v40  ;;  %v3186_v29 = vpop.eup %3185 }
 0x2d7   :  { %v3188_v51 = vpop.eup %3187 }
 0x2d8   :  { %2254 = vst [vmem:[%s4969_s8 + $0x60] sm:$0xff] %v2246_v32  ;;  %v2568_v5 = vmul.f32 %v3188_v51, %v3186_v29  ;;  %v3190_v23 = vpop.eup %3189 }
 0x2da   :  { %2698 = vst [vmem:[%s4969_s8 + $0x70] sm:$0xff] %v2568_v5 }
 0x2db   :  { %v3192_v9 = vpop.eup %3191 }
 0x2dc   :  { %v2247_v54 = vmul.f32 %v3192_v9, %v3190_v23  ;;  %v3194_v15 = vpop.eup %3193 }
 0x2de   :  { %v3196_v38 = vpop.eup %3195  ;;  %2255 = vst [vmem:[%s4969_s8 + $0x68] sm:$0xff] %v2247_v54 }
 0x2df   :  { %v2569_v11 = vmul.f32 %v3196_v38, %v3194_v15 }
 0x2e1   :  { %2699 = vst [vmem:[%s4969_s8 + $0x78] sm:$0xff] %v2569_v11 }

</bundles_post_ra>
